<compile_context>
chip_gen: v7x
topology: tpu7x:2x2x1
jax: 0.10.0
libtpu: 0.0.40
codegen_flags: <defaults>
</compile_context>

<pallas_src>
import numpy as np
import jax
import jax.numpy as jnp
from jax.experimental import pallas as pl
from jax.experimental.pallas import tpu as pltpu


def _round_up(x, m):
    return ((x + m - 1) // m) * m


def _build_border_masks(H, W):
    """Per-image (9, H*W) f32 masks: masks[kh*3+kw, i*W+j] = 1 iff tap (kh,kw)
    reads an in-bounds input pixel for output pixel (i, j) ('same' padding)."""
    i = np.arange(H).reshape(H, 1)
    j = np.arange(W).reshape(1, W)
    rows = []
    for kh in range(3):
        for kw in range(3):
            dh, dw = kh - 1, kw - 1
            ok = ((i + dh >= 0) & (i + dh < H) & (j + dw >= 0) & (j + dw < W))
            rows.append(ok.reshape(-1).astype(np.float32))
    return jnp.asarray(np.stack(rows, axis=0))                    # (9, H*W)


def _pick_batch_tile(N):
    """Number of images folded into the lane axis per grid step.

    Keep >= 2 parallel grid steps when the batch allows it (v7x has 2
    TensorCores that split a "parallel" grid axis); fold the remaining batch
    into lanes to amortize the ~0.35us per-step overhead on v5e/v6e (single
    TC, serial grid)."""
    if N <= 1:
        return max(N, 1)
    for nt in range(N // 2, 0, -1):          # largest divisor leaving >= 2 steps
        if N % nt == 0:
            return nt
    return 1


# ---------------------------------------------------------------------------
# Fused Pallas kernel: conv3x3 -> relu -> conv3x3 -> +residual -> flatten -> fc
# ---------------------------------------------------------------------------

def _make_fused_kernel(H, W, Cin_p, C1, C2, Dp, Nt):
    HW = H * W
    L = Nt * HW
    CENTER_TAP = 4        # (kh, kw) == (1, 1): its mask is all ones -> skip mul

    def _conv3x3(a, w_ref, b_ref, mask_rows):
        # a: (Cin_, L).  'same' 3x3 conv as ONE im2col-style MXU dot: stack the
        # 9 rolled+masked tap slabs along sublanes -> (9*Cin_, L) and contract
        # against the repacked (Cout, 9*Cin_) weight.
        slabs = []
        for kh in range(3):
            for kw in range(3):
                tap = kh * 3 + kw
                off = (kh - 1) * W + (kw - 1)            # flat spatial offset
                if off == 0:
                    sh = a
                else:
                    # shifted[:, l] = a[:, (l + off) mod L]; wrapped lanes
                    # (image borders / image seams when Nt > 1) are zeroed by
                    # the per-image-tiled border mask.
                    sh = pltpu.roll(a, shift=(-off) % L, axis=1)
                if tap != CENTER_TAP:
                    sh = sh * mask_rows[tap]
                slabs.append(sh)
        patches = jnp.concatenate(slabs, axis=0)         # (9*Cin_, L), 8-aligned
        return jnp.dot(w_ref[...], patches,
                       preferred_element_type=jnp.float32) + b_ref[...]

    def kernel(m_ref, x_ref, w1_ref, b1_ref, w2_ref, b2_ref, wf_ref, bf_ref,
               conv1_ref, relu1_ref, add1_ref, fc_ref):
        # Precomputed constant border masks (constant index_map -> loaded once
        # per step, no in-kernel iota/compare chains); reused by both convs.
        mask_rows = [m_ref[t:t + 1, :] for t in range(9)]
        x = x_ref[0]                                          # (Cin_p, L)

        conv1 = _conv3x3(x, w1_ref, b1_ref, mask_rows)        # (C1, L)
        conv1_ref[0] = conv1
        r1 = jnp.maximum(conv1, 0.0)                          # fused ReLU
        relu1_ref[0] = r1

        conv2 = _conv3x3(r1, w2_ref, b2_ref, mask_rows)       # (C2, L)
        a1 = conv2 + r1                                       # fused residual
        add1_ref[0] = a1

        # flatten(NCHW) + Linear with a lane-dense (Dp >= 128) padded output:
        # one batched MXU contraction over the spatial dim + one channel
        # reduce + one bias add (replaces the old per-channel python loop).
        a3 = a1.reshape(C2, Nt, HW)                           # split folded batch
        part = jnp.einsum('cns,csd->cnd', a3, wf_ref[...],
                          preferred_element_type=jnp.float32)  # (C2, Nt, Dp)
        fc_ref[0] = jnp.sum(part, axis=0) + bf_ref[...]        # (Nt, Dp)

    return kernel


def make_fused_forward(w1, b1, w2, b2, wf, bf, H, W):
    """Returns a jitted fn: x_nchw -> [conv1, relu1, add1, fc] (PyTorch layouts)."""
    C1, Cin, KH, KW = w1.shape
    C2 = w2.shape[0]
    D = wf.shape[0]
    assert (KH, KW) == (3, 3)
    assert C1 % 8 == 0 and C2 % 8 == 0, "conv output channels assumed 8-aligned"
    HW = H * W
    assert HW % 128 == 0, "spatial size assumed lane-aligned"

    # Pad input channels so the stacked im2col chunks are sublane-tile aligned,
    # and pad the FC width to a full 128-lane vreg (unmasked stores).
    Cin_p = _round_up(Cin, 8)
    Dp = _round_up(max(D, 128), 128)

    # --- one-time parameter repacking (PyTorch OIHW / (out,in) layouts) ------
    w1p = jnp.pad(w1, ((0, 0), (0, Cin_p - Cin), (0, 0), (0, 0)))
    w1r = jnp.transpose(w1p, (0, 2, 3, 1)).reshape(C1, 9 * Cin_p)   # (C1, 9*Cin_p)
    w2r = jnp.transpose(w2, (0, 2, 3, 1)).reshape(C2, 9 * C1)       # (C2, 9*C1)
    b1r = b1.reshape(C1, 1)
    b2r = b2.reshape(C2, 1)
    wf3 = jnp.transpose(wf.reshape(D, C2, HW), (1, 2, 0))           # (C2, HW, D)
    wf3p = jnp.pad(wf3, ((0, 0), (0, 0), (0, Dp - D)))              # (C2, HW, Dp)
    bfp = jnp.pad(bf, (0, Dp - D)).reshape(1, Dp)
    masks_img = _build_border_masks(H, W)                           # (9, HW)

    @jax.jit
    def fused_forward(x_nchw):
        N = x_nchw.shape[0]
        Nt = _pick_batch_tile(N)            # images folded into lanes per step
        G = N // Nt                         # grid steps (>= 2 when N >= 2)
        L = Nt * HW

        # Fold Nt images into the lane axis: (G, Cin_p, Nt*HW).
        x_r = x_nchw.reshape(N, Cin, HW)
        if Cin_p != Cin:
            x_r = jnp.pad(x_r, ((0, 0), (0, Cin_p - Cin), (0, 0)))
        x_f = (x_r.reshape(G, Nt, Cin_p, HW).transpose(0, 2, 1, 3)
               .reshape(G, Cin_p, L))
        masks = jnp.tile(masks_img, (1, Nt))                        # (9, L)

        kernel = _make_fused_kernel(H, W, Cin_p, C1, C2, Dp, Nt)

        flops = 2 * N * HW * (9 * Cin_p * C1 + 9 * C1 * C2 + C2 * Dp)
        bytes_accessed = 4 * (x_f.size + masks.size + w1r.size + b1r.size
                              + w2r.size + b2r.size + wf3p.size + bfp.size
                              + G * (2 * C1 + C2) * L + G * Nt * Dp)

        grid_spec = pltpu.PrefetchScalarGridSpec(
            num_scalar_prefetch=0,
            grid=(G,),                                   # batch-parallel
            in_specs=[
                pl.BlockSpec((9, L), lambda g: (0, 0)),              # masks
                pl.BlockSpec((1, Cin_p, L), lambda g: (g, 0, 0)),    # x
                pl.BlockSpec((C1, 9 * Cin_p), lambda g: (0, 0)),     # w1
                pl.BlockSpec((C1, 1), lambda g: (0, 0)),             # b1
                pl.BlockSpec((C2, 9 * C1), lambda g: (0, 0)),        # w2
                pl.BlockSpec((C2, 1), lambda g: (0, 0)),             # b2
                pl.BlockSpec((C2, HW, Dp), lambda g: (0, 0, 0)),     # wf
                pl.BlockSpec((1, Dp), lambda g: (0, 0)),             # bf
            ],
            out_specs=[
                pl.BlockSpec((1, C1, L), lambda g: (g, 0, 0)),       # conv1
                pl.BlockSpec((1, C1, L), lambda g: (g, 0, 0)),       # relu1
                pl.BlockSpec((1, C2, L), lambda g: (g, 0, 0)),       # add1
                pl.BlockSpec((1, Nt, Dp), lambda g: (g, 0, 0)),      # fc (padded)
            ],
        )
        conv1, relu1, add1, fc = pl.pallas_call(
            kernel,
            out_shape=(jax.ShapeDtypeStruct((G, C1, L), jnp.float32),
                       jax.ShapeDtypeStruct((G, C1, L), jnp.float32),
                       jax.ShapeDtypeStruct((G, C2, L), jnp.float32),
                       jax.ShapeDtypeStruct((G, Nt, Dp), jnp.float32)),
            grid_spec=grid_spec,
            compiler_params=pltpu.CompilerParams(
                dimension_semantics=("parallel",),       # v7x: 2 TCs split grid
                vmem_limit_bytes=32 * 1024 * 1024),
            cost_estimate=pl.CostEstimate(
                flops=flops, transcendentals=0, bytes_accessed=bytes_accessed),
        )(masks, x_f, w1r, b1r, w2r, b2r, wf3p, bfp)

        # Unfold back to PyTorch NCHW / (N, D) layouts (pure reshapes at Nt=1).
        def unfold(t, C):
            return (t.reshape(G, C, Nt, HW).transpose(0, 2, 1, 3)
                    .reshape(N, C, H, W))

        return [unfold(conv1, C1), unfold(relu1, C1), unfold(add1, C2),
                fc.reshape(N, Dp)[:, :D]]

    return fused_forward


# ---------------------------------------------------------------------------
# Graph executor mirroring PytorchModelGradients.forward
# ---------------------------------------------------------------------------

class PallasModelGradients:
    """JAX/Pallas analogue of PytorchModelGradients.

    Walks a topologically-sorted node list, runs each node's op on the output
    tensors of its incoming nodes (build_input_tensors_list / run_operation),
    records interest-point tensors, and returns the tensors of the declared
    output nodes (generate_outputs semantics)."""

    def __init__(self, node_sort, interest_points, output_list):
        # node_sort: list of (name, op_fn_or_None, [input_node_names]).
        # op_fn None marks a DummyPlaceHolder (model input) node.
        self.node_sort = list(node_sort)
        self.interest_points = list(interest_points)
        self.output_list = list(output_list)
        self.interest_points_tensors = []

    def forward(self, input_node_to_input_tensor):
        node_to_output_tensors_dict = {}
        for name, op_fn, in_names in self.node_sort:
            # build_input_tensors_list
            if op_fn is None:                                # DummyPlaceHolder
                out_tensors_of_n = input_node_to_input_tensor[name]
            else:
                input_tensors = []
                for src in in_names:
                    input_tensors.extend(node_to_output_tensors_dict[src])
                out_tensors_of_n = op_fn(*input_tensors)     # run_operation
            # interest-point collection + node output bookkeeping
            if isinstance(out_tensors_of_n, (list, tuple)):
                out_list = list(out_tensors_of_n)
                if name in self.interest_points:
                    # TODO(synk): retain_grad / requires_grad has no forward
                    # equivalent in JAX; grads come from jax.vjp over forward.
                    self.interest_points_tensors.extend(out_list)
                node_to_output_tensors_dict[name] = out_list
            else:
                if name in self.interest_points:
                    self.interest_points_tensors.append(out_tensors_of_n)
                node_to_output_tensors_dict[name] = [out_tensors_of_n]
        # generate_outputs
        outputs = []
        for n in self.output_list:
            out_tensors_of_n = node_to_output_tensors_dict[n]
            if len(out_tensors_of_n) > 1:
                outputs.append(out_tensors_of_n)
            else:
                outputs += out_tensors_of_n
        return outputs


# ---------------------------------------------------------------------------
# Pure-JAX reference (structural correctness check of the fused kernel)
# ---------------------------------------------------------------------------

def _reference_forward(x, w1, b1, w2, b2, wf, bf):
    def conv(inp, w, b):
        y = jax.lax.conv_general_dilated(
            inp, w, window_strides=(1, 1), padding="SAME",
            dimension_numbers=("NCHW", "OIHW", "NCHW"),
            precision=jax.lax.Precision.HIGHEST)
        return y + b.reshape(1, -1, 1, 1)
    c1 = conv(x, w1, b1)
    r1 = jnp.maximum(c1, 0.0)
    c2 = conv(r1, w2, b2)
    a1 = c2 + r1
    fc = jnp.dot(a1.reshape(a1.shape[0], -1), wf.T,
                 precision=jax.lax.Precision.HIGHEST) + bf
    return c1, r1, a1, fc


# ---------------------------------------------------------------------------
# Build a representative graph with deterministic synthetic parameters
# ---------------------------------------------------------------------------

if __name__ == "__main__":
    N, Cin, H, W = 2, 4, 16, 16
    C1, C2, D = 8, 8, 32

    key = jax.random.PRNGKey(0)
    kx, k1, k2, k3, k4, k5, k6 = jax.random.split(key, 7)
    x = jax.random.normal(kx, (N, Cin, H, W), jnp.float32)
    w1 = 0.10 * jax.random.normal(k1, (C1, Cin, 3, 3), jnp.float32)   # conv1 OIHW
    b1 = 0.10 * jax.random.normal(k2, (C1,), jnp.float32)
    w2 = 0.10 * jax.random.normal(k3, (C2, C1, 3, 3), jnp.float32)    # conv2 OIHW
    b2 = 0.10 * jax.random.normal(k4, (C2,), jnp.float32)
    wf = 0.05 * jax.random.normal(k5, (D, C2 * H * W), jnp.float32)   # fc (out,in)
    bf = 0.05 * jax.random.normal(k6, (D,), jnp.float32)

    # The representative graph's compute nodes are grouped into one fused
    # functional node ("backbone" = single pallas_call keeping every
    # intermediate in VMEM); the remaining nodes are free selections exposing
    # the per-op interest points under their original names.
    fused = make_fused_forward(w1, b1, w2, b2, wf, bf, H, W)

    node_sort = [
        ("input",    None,                              []),
        ("backbone", fused,                             ["input"]),
        ("conv1",    lambda c1, r1, a1, y: c1,          ["backbone"]),
        ("relu1",    lambda c1, r1, a1, y: r1,          ["backbone"]),
        ("add1",     lambda c1, r1, a1, y: a1,          ["backbone"]),
        ("fc",       lambda c1, r1, a1, y: y,           ["backbone"]),
    ]

    model = PallasModelGradients(
        node_sort,
        interest_points=["conv1", "relu1", "add1", "fc"],
        output_list=["fc"],
    )

    outputs = model.forward({"input": x})
    outputs = jax.block_until_ready(outputs)
    ip_tensors = jax.block_until_ready(model.interest_points_tensors)

    # Shape sanity checks against the PyTorch-convention layouts.
    assert outputs[0].shape == (N, D)
    assert ip_tensors[0].shape == (N, C1, H, W)      # conv1
    assert ip_tensors[1].shape == (N, C1, H, W)      # relu1
    assert ip_tensors[2].shape == (N, C2, H, W)      # add1
    assert ip_tensors[3].shape == (N, D)             # fc

    # Structural correctness check against a pure-JAX reference.  Tolerance is
    # generous: the in-kernel MXU dots use default pass precision while the
    # reference uses Precision.HIGHEST; any layout / tap-order / roll-direction
    # bug would produce O(0.1+) errors, far above this threshold.
    refs = _reference_forward(x, w1, b1, w2, b2, wf, bf)
    for name, got, ref in zip(["conv1", "relu1", "add1", "fc"], ip_tensors, refs):
        err = float(jnp.max(jnp.abs(got - ref)))
        assert bool(jnp.allclose(got, ref, atol=3e-2, rtol=3e-2)), (name, err)

    print("KERNEL_OK")
</pallas_src>

<mosaic_0001>
module attributes {stable_mosaic.version = 11 : i64} {
  func.func @kernel(%arg0: i32, %arg1: memref<9x256xf32, #tpu.memory_space<vmem>>, %arg2: memref<1x8x256xf32, #tpu.memory_space<vmem>>, %arg3: memref<8x72xf32, #tpu.memory_space<vmem>>, %arg4: memref<8x1xf32, #tpu.memory_space<vmem>>, %arg5: memref<8x72xf32, #tpu.memory_space<vmem>>, %arg6: memref<8x1xf32, #tpu.memory_space<vmem>>, %arg7: memref<8x256x128xf32, #tpu.memory_space<vmem>>, %arg8: memref<1x128xf32, #tpu.memory_space<vmem>>, %arg9: memref<1x8x256xf32, #tpu.memory_space<vmem>>, %arg10: memref<1x8x256xf32, #tpu.memory_space<vmem>>, %arg11: memref<1x8x256xf32, #tpu.memory_space<vmem>>, %arg12: memref<1x1x128xf32, #tpu.memory_space<vmem>>) attributes {dimension_semantics = [#tpu.dimension_semantics<parallel>], iteration_bounds = array<i64: 2>, scalar_prefetch = 0 : i64, scratch_operands = 0 : i64, tpu.core_type = #tpu.core_type<tc>, window_params = [{pipeline_mode = #tpu.pipeline_mode<synchronous>, transform_indices = @transform_0, window_bounds = array<i64: 9, 256>}, {transform_indices = @transform_1, window_bounds = array<i64: 1, 8, 256>}, {pipeline_mode = #tpu.pipeline_mode<synchronous>, transform_indices = @transform_2, window_bounds = array<i64: 8, 72>}, {pipeline_mode = #tpu.pipeline_mode<synchronous>, transform_indices = @transform_3, window_bounds = array<i64: 8, 1>}, {pipeline_mode = #tpu.pipeline_mode<synchronous>, transform_indices = @transform_4, window_bounds = array<i64: 8, 72>}, {pipeline_mode = #tpu.pipeline_mode<synchronous>, transform_indices = @transform_5, window_bounds = array<i64: 8, 1>}, {pipeline_mode = #tpu.pipeline_mode<synchronous>, transform_indices = @transform_6, window_bounds = array<i64: 8, 256, 128>}, {pipeline_mode = #tpu.pipeline_mode<synchronous>, transform_indices = @transform_7, window_bounds = array<i64: 1, 128>}, {transform_indices = @transform_8, window_bounds = array<i64: 1, 8, 256>}, {transform_indices = @transform_9, window_bounds = array<i64: 1, 8, 256>}, {transform_indices = @transform_10, window_bounds = array<i64: 1, 8, 256>}, {transform_indices = @transform_11, window_bounds = array<i64: 1, 1, 128>}]} {
    %c0 = arith.constant 0 : index
    %c0_0 = arith.constant 0 : index
    %0 = vector.load %arg1[%c0, %c0_0] : memref<9x256xf32, #tpu.memory_space<vmem>>, vector<1x256xf32>
    %c1 = arith.constant 1 : index
    %c0_1 = arith.constant 0 : index
    %1 = vector.load %arg1[%c1, %c0_1] : memref<9x256xf32, #tpu.memory_space<vmem>>, vector<1x256xf32>
    %c2 = arith.constant 2 : index
    %c0_2 = arith.constant 0 : index
    %2 = vector.load %arg1[%c2, %c0_2] : memref<9x256xf32, #tpu.memory_space<vmem>>, vector<1x256xf32>
    %c3 = arith.constant 3 : index
    %c0_3 = arith.constant 0 : index
    %3 = vector.load %arg1[%c3, %c0_3] : memref<9x256xf32, #tpu.memory_space<vmem>>, vector<1x256xf32>
    %c5 = arith.constant 5 : index
    %c0_4 = arith.constant 0 : index
    %4 = vector.load %arg1[%c5, %c0_4] : memref<9x256xf32, #tpu.memory_space<vmem>>, vector<1x256xf32>
    %c6 = arith.constant 6 : index
    %c0_5 = arith.constant 0 : index
    %5 = vector.load %arg1[%c6, %c0_5] : memref<9x256xf32, #tpu.memory_space<vmem>>, vector<1x256xf32>
    %c7 = arith.constant 7 : index
    %c0_6 = arith.constant 0 : index
    %6 = vector.load %arg1[%c7, %c0_6] : memref<9x256xf32, #tpu.memory_space<vmem>>, vector<1x256xf32>
    %c8 = arith.constant 8 : index
    %c0_7 = arith.constant 0 : index
    %7 = vector.load %arg1[%c8, %c0_7] : memref<9x256xf32, #tpu.memory_space<vmem>>, vector<1x256xf32>
    %c0_8 = arith.constant 0 : index
    %c0_9 = arith.constant 0 : index
    %c0_10 = arith.constant 0 : index
    %8 = vector.load %arg2[%c0_8, %c0_9, %c0_10] : memref<1x8x256xf32, #tpu.memory_space<vmem>>, vector<1x8x256xf32>
    %9 = vector.shape_cast %8 : vector<1x8x256xf32> to vector<8x256xf32>
    %c17_i32 = arith.constant 17 : i32
    %10 = tpu.dynamic_rotate %9 by %c17_i32 dim 1 : vector<8x256xf32>, i32 -> vector<8x256xf32>
    %11 = vector.broadcast %0 : vector<1x256xf32> to vector<8x256xf32>
    %12 = arith.mulf %10, %11 : vector<8x256xf32>
    %c16_i32 = arith.constant 16 : i32
    %13 = tpu.dynamic_rotate %9 by %c16_i32 dim 1 : vector<8x256xf32>, i32 -> vector<8x256xf32>
    %14 = vector.broadcast %1 : vector<1x256xf32> to vector<8x256xf32>
    %15 = arith.mulf %13, %14 : vector<8x256xf32>
    %c15_i32 = arith.constant 15 : i32
    %16 = tpu.dynamic_rotate %9 by %c15_i32 dim 1 : vector<8x256xf32>, i32 -> vector<8x256xf32>
    %17 = vector.broadcast %2 : vector<1x256xf32> to vector<8x256xf32>
    %18 = arith.mulf %16, %17 : vector<8x256xf32>
    %c1_i32 = arith.constant 1 : i32
    %19 = tpu.dynamic_rotate %9 by %c1_i32 dim 1 : vector<8x256xf32>, i32 -> vector<8x256xf32>
    %20 = vector.broadcast %3 : vector<1x256xf32> to vector<8x256xf32>
    %21 = arith.mulf %19, %20 : vector<8x256xf32>
    %c255_i32 = arith.constant 255 : i32
    %22 = tpu.dynamic_rotate %9 by %c255_i32 dim 1 : vector<8x256xf32>, i32 -> vector<8x256xf32>
    %23 = vector.broadcast %4 : vector<1x256xf32> to vector<8x256xf32>
    %24 = arith.mulf %22, %23 : vector<8x256xf32>
    %c241_i32 = arith.constant 241 : i32
    %25 = tpu.dynamic_rotate %9 by %c241_i32 dim 1 : vector<8x256xf32>, i32 -> vector<8x256xf32>
    %26 = vector.broadcast %5 : vector<1x256xf32> to vector<8x256xf32>
    %27 = arith.mulf %25, %26 : vector<8x256xf32>
    %c240_i32 = arith.constant 240 : i32
    %28 = tpu.dynamic_rotate %9 by %c240_i32 dim 1 : vector<8x256xf32>, i32 -> vector<8x256xf32>
    %29 = vector.broadcast %6 : vector<1x256xf32> to vector<8x256xf32>
    %30 = arith.mulf %28, %29 : vector<8x256xf32>
    %c239_i32 = arith.constant 239 : i32
    %31 = tpu.dynamic_rotate %9 by %c239_i32 dim 1 : vector<8x256xf32>, i32 -> vector<8x256xf32>
    %32 = vector.broadcast %7 : vector<1x256xf32> to vector<8x256xf32>
    %33 = arith.mulf %31, %32 : vector<8x256xf32>
    %34 = tpu.concatenate %12, %15, %18, %21, %9, %24, %27, %30, %33 in 0 : vector<8x256xf32>, vector<8x256xf32>, vector<8x256xf32>, vector<8x256xf32>, vector<8x256xf32>, vector<8x256xf32>, vector<8x256xf32>, vector<8x256xf32>, vector<8x256xf32> -> vector<72x256xf32>
    %c0_11 = arith.constant 0 : index
    %c0_12 = arith.constant 0 : index
    %35 = vector.load %arg3[%c0_11, %c0_12] : memref<8x72xf32, #tpu.memory_space<vmem>>, vector<8x72xf32>
    %cst = arith.constant dense<0.000000e+00> : vector<8x256xf32>
    %36 = tpu.matmul %35, %34, %cst {dimension_numbers = #tpu.dot_dimension_numbers<[1], [0], [0], [1], [0, 0, 1, 1], [], []>} : vector<8x72xf32>, vector<72x256xf32>, vector<8x256xf32> -> vector<8x256xf32>
    %c0_13 = arith.constant 0 : index
    %c0_14 = arith.constant 0 : index
    %37 = vector.load %arg4[%c0_13, %c0_14] : memref<8x1xf32, #tpu.memory_space<vmem>>, vector<8x1xf32>
    %38 = vector.broadcast %37 : vector<8x1xf32> to vector<8x256xf32>
    %39 = arith.addf %36, %38 : vector<8x256xf32>
    %c0_15 = arith.constant 0 : index
    %c0_16 = arith.constant 0 : index
    %c0_17 = arith.constant 0 : index
    %40 = vector.load %arg9[%c0_15, %c0_16, %c0_17] : memref<1x8x256xf32, #tpu.memory_space<vmem>>, vector<1x8x256xf32>
    %41 = vector.shape_cast %40 : vector<1x8x256xf32> to vector<8x256xf32>
    %42 = vector.shape_cast %39 : vector<8x256xf32> to vector<1x8x256xf32>
    tpu.vector_store %arg9[%c0_15, %c0_16, %c0_17], %42 {strides = array<i32>} : memref<1x8x256xf32, #tpu.memory_space<vmem>>, vector<1x8x256xf32>,
    %cst_18 = arith.constant 0.000000e+00 : f32
    %43 = vector.broadcast %cst_18 : f32 to vector<8x256xf32>
    %44 = arith.maximumf %39, %43 : vector<8x256xf32>
    %c0_19 = arith.constant 0 : index
    %c0_20 = arith.constant 0 : index
    %c0_21 = arith.constant 0 : index
    %45 = vector.load %arg10[%c0_19, %c0_20, %c0_21] : memref<1x8x256xf32, #tpu.memory_space<vmem>>, vector<1x8x256xf32>
    %46 = vector.shape_cast %45 : vector<1x8x256xf32> to vector<8x256xf32>
    %47 = vector.shape_cast %44 : vector<8x256xf32> to vector<1x8x256xf32>
    tpu.vector_store %arg10[%c0_19, %c0_20, %c0_21], %47 {strides = array<i32>} : memref<1x8x256xf32, #tpu.memory_space<vmem>>, vector<1x8x256xf32>,
    %c17_i32_22 = arith.constant 17 : i32
    %48 = tpu.dynamic_rotate %44 by %c17_i32_22 dim 1 : vector<8x256xf32>, i32 -> vector<8x256xf32>
    %49 = vector.broadcast %0 : vector<1x256xf32> to vector<8x256xf32>
    %50 = arith.mulf %48, %49 : vector<8x256xf32>
    %c16_i32_23 = arith.constant 16 : i32
    %51 = tpu.dynamic_rotate %44 by %c16_i32_23 dim 1 : vector<8x256xf32>, i32 -> vector<8x256xf32>
    %52 = vector.broadcast %1 : vector<1x256xf32> to vector<8x256xf32>
    %53 = arith.mulf %51, %52 : vector<8x256xf32>
    %c15_i32_24 = arith.constant 15 : i32
    %54 = tpu.dynamic_rotate %44 by %c15_i32_24 dim 1 : vector<8x256xf32>, i32 -> vector<8x256xf32>
    %55 = vector.broadcast %2 : vector<1x256xf32> to vector<8x256xf32>
    %56 = arith.mulf %54, %55 : vector<8x256xf32>
    %c1_i32_25 = arith.constant 1 : i32
    %57 = tpu.dynamic_rotate %44 by %c1_i32_25 dim 1 : vector<8x256xf32>, i32 -> vector<8x256xf32>
    %58 = vector.broadcast %3 : vector<1x256xf32> to vector<8x256xf32>
    %59 = arith.mulf %57, %58 : vector<8x256xf32>
    %c255_i32_26 = arith.constant 255 : i32
    %60 = tpu.dynamic_rotate %44 by %c255_i32_26 dim 1 : vector<8x256xf32>, i32 -> vector<8x256xf32>
    %61 = vector.broadcast %4 : vector<1x256xf32> to vector<8x256xf32>
    %62 = arith.mulf %60, %61 : vector<8x256xf32>
    %c241_i32_27 = arith.constant 241 : i32
    %63 = tpu.dynamic_rotate %44 by %c241_i32_27 dim 1 : vector<8x256xf32>, i32 -> vector<8x256xf32>
    %64 = vector.broadcast %5 : vector<1x256xf32> to vector<8x256xf32>
    %65 = arith.mulf %63, %64 : vector<8x256xf32>
    %c240_i32_28 = arith.constant 240 : i32
    %66 = tpu.dynamic_rotate %44 by %c240_i32_28 dim 1 : vector<8x256xf32>, i32 -> vector<8x256xf32>
    %67 = vector.broadcast %6 : vector<1x256xf32> to vector<8x256xf32>
    %68 = arith.mulf %66, %67 : vector<8x256xf32>
    %c239_i32_29 = arith.constant 239 : i32
    %69 = tpu.dynamic_rotate %44 by %c239_i32_29 dim 1 : vector<8x256xf32>, i32 -> vector<8x256xf32>
    %70 = vector.broadcast %7 : vector<1x256xf32> to vector<8x256xf32>
    %71 = arith.mulf %69, %70 : vector<8x256xf32>
    %72 = tpu.concatenate %50, %53, %56, %59, %44, %62, %65, %68, %71 in 0 : vector<8x256xf32>, vector<8x256xf32>, vector<8x256xf32>, vector<8x256xf32>, vector<8x256xf32>, vector<8x256xf32>, vector<8x256xf32>, vector<8x256xf32>, vector<8x256xf32> -> vector<72x256xf32>
    %c0_30 = arith.constant 0 : index
    %c0_31 = arith.constant 0 : index
    %73 = vector.load %arg5[%c0_30, %c0_31] : memref<8x72xf32, #tpu.memory_space<vmem>>, vector<8x72xf32>
    %cst_32 = arith.constant dense<0.000000e+00> : vector<8x256xf32>
    %74 = tpu.matmul %73, %72, %cst_32 {dimension_numbers = #tpu.dot_dimension_numbers<[1], [0], [0], [1], [0, 0, 1, 1], [], []>} : vector<8x72xf32>, vector<72x256xf32>, vector<8x256xf32> -> vector<8x256xf32>
    %c0_33 = arith.constant 0 : index
    %c0_34 = arith.constant 0 : index
    %75 = vector.load %arg6[%c0_33, %c0_34] : memref<8x1xf32, #tpu.memory_space<vmem>>, vector<8x1xf32>
    %76 = vector.broadcast %75 : vector<8x1xf32> to vector<8x256xf32>
    %77 = arith.addf %74, %76 : vector<8x256xf32>
    %78 = arith.addf %77, %44 : vector<8x256xf32>
    %c0_35 = arith.constant 0 : index
    %c0_36 = arith.constant 0 : index
    %c0_37 = arith.constant 0 : index
    %79 = vector.load %arg11[%c0_35, %c0_36, %c0_37] : memref<1x8x256xf32, #tpu.memory_space<vmem>>, vector<1x8x256xf32>
    %80 = vector.shape_cast %79 : vector<1x8x256xf32> to vector<8x256xf32>
    %81 = vector.shape_cast %78 : vector<8x256xf32> to vector<1x8x256xf32>
    tpu.vector_store %arg11[%c0_35, %c0_36, %c0_37], %81 {strides = array<i32>} : memref<1x8x256xf32, #tpu.memory_space<vmem>>, vector<1x8x256xf32>,
    %82 = vector.shape_cast %78 : vector<8x256xf32> to vector<8x1x256xf32>
    %c0_38 = arith.constant 0 : index
    %c0_39 = arith.constant 0 : index
    %c0_40 = arith.constant 0 : index
    %83 = vector.load %arg7[%c0_38, %c0_39, %c0_40] : memref<8x256x128xf32, #tpu.memory_space<vmem>>, vector<8x256x128xf32>
    "tpu.trace_start"() <{level = 10 : i32, message = "cns,csd->cnd"}> : () -> ()
    %cst_41 = arith.constant dense<0.000000e+00> : vector<8x1x128xf32>
    %84 = tpu.matmul %82, %83, %cst_41 {dimension_numbers = #tpu.dot_dimension_numbers<[2], [1], [1], [2], [0, 0, 0, 1, 1, 2], [0], [0]>} : vector<8x1x256xf32>, vector<8x256x128xf32>, vector<8x1x128xf32> -> vector<8x1x128xf32>
    "tpu.trace_stop"() : () -> ()
    %cst_42 = arith.constant dense<0.000000e+00> : vector<1x128xf32>
    %85 = vector.multi_reduction <add>, %84, %cst_42 [0] : vector<8x1x128xf32> to vector<1x128xf32>
    %c0_43 = arith.constant 0 : index
    %c0_44 = arith.constant 0 : index
    %86 = vector.load %arg8[%c0_43, %c0_44] : memref<1x128xf32, #tpu.memory_space<vmem>>, vector<1x128xf32>
    %87 = arith.addf %85, %86 : vector<1x128xf32>
    %c0_45 = arith.constant 0 : index
    %c0_46 = arith.constant 0 : index
    %c0_47 = arith.constant 0 : index
    %88 = vector.load %arg12[%c0_45, %c0_46, %c0_47] : memref<1x1x128xf32, #tpu.memory_space<vmem>>, vector<1x1x128xf32>
    %89 = vector.shape_cast %88 : vector<1x1x128xf32> to vector<1x128xf32>
    %90 = vector.shape_cast %87 : vector<1x128xf32> to vector<1x1x128xf32>
    tpu.vector_store %arg12[%c0_45, %c0_46, %c0_47], %90 {strides = array<i32>} : memref<1x1x128xf32, #tpu.memory_space<vmem>>, vector<1x1x128xf32>,
    return
  }
  func.func @transform_0(%arg0: i32) -> (i32, i32) {
    %c0_i32 = arith.constant 0 : i32
    %c0_i32_0 = arith.constant 0 : i32
    %c0_i32_1 = arith.constant 0 : i32
    return %c0_i32, %c0_i32_0 : i32, i32
  }
  func.func @transform_1(%arg0: i32) -> (i32, i32, i32) {
    %c0_i32 = arith.constant 0 : i32
    %c0_i32_0 = arith.constant 0 : i32
    %c0_i32_1 = arith.constant 0 : i32
    return %arg0, %c0_i32, %c0_i32_0 : i32, i32, i32
  }
  func.func @transform_2(%arg0: i32) -> (i32, i32) {
    %c0_i32 = arith.constant 0 : i32
    %c0_i32_0 = arith.constant 0 : i32
    %c0_i32_1 = arith.constant 0 : i32
    return %c0_i32, %c0_i32_0 : i32, i32
  }
  func.func @transform_3(%arg0: i32) -> (i32, i32) {
    %c0_i32 = arith.constant 0 : i32
    %c0_i32_0 = arith.constant 0 : i32
    %c0_i32_1 = arith.constant 0 : i32
    return %c0_i32, %c0_i32_0 : i32, i32
  }
  func.func @transform_4(%arg0: i32) -> (i32, i32) {
    %c0_i32 = arith.constant 0 : i32
    %c0_i32_0 = arith.constant 0 : i32
    %c0_i32_1 = arith.constant 0 : i32
    return %c0_i32, %c0_i32_0 : i32, i32
  }
  func.func @transform_5(%arg0: i32) -> (i32, i32) {
    %c0_i32 = arith.constant 0 : i32
    %c0_i32_0 = arith.constant 0 : i32
    %c0_i32_1 = arith.constant 0 : i32
    return %c0_i32, %c0_i32_0 : i32, i32
  }
  func.func @transform_6(%arg0: i32) -> (i32, i32, i32) {
    %c0_i32 = arith.constant 0 : i32
    %c0_i32_0 = arith.constant 0 : i32
    %c0_i32_1 = arith.constant 0 : i32
    %c0_i32_2 = arith.constant 0 : i32
    return %c0_i32, %c0_i32_0, %c0_i32_1 : i32, i32, i32
  }
  func.func @transform_7(%arg0: i32) -> (i32, i32) {
    %c0_i32 = arith.constant 0 : i32
    %c0_i32_0 = arith.constant 0 : i32
    %c0_i32_1 = arith.constant 0 : i32
    return %c0_i32, %c0_i32_0 : i32, i32
  }
  func.func @transform_8(%arg0: i32) -> (i32, i32, i32) {
    %c0_i32 = arith.constant 0 : i32
    %c0_i32_0 = arith.constant 0 : i32
    %c0_i32_1 = arith.constant 0 : i32
    return %arg0, %c0_i32, %c0_i32_0 : i32, i32, i32
  }
  func.func @transform_9(%arg0: i32) -> (i32, i32, i32) {
    %c0_i32 = arith.constant 0 : i32
    %c0_i32_0 = arith.constant 0 : i32
    %c0_i32_1 = arith.constant 0 : i32
    return %arg0, %c0_i32, %c0_i32_0 : i32, i32, i32
  }
  func.func @transform_10(%arg0: i32) -> (i32, i32, i32) {
    %c0_i32 = arith.constant 0 : i32
    %c0_i32_0 = arith.constant 0 : i32
    %c0_i32_1 = arith.constant 0 : i32
    return %arg0, %c0_i32, %c0_i32_0 : i32, i32, i32
  }
  func.func @transform_11(%arg0: i32) -> (i32, i32, i32) {
    %c0_i32 = arith.constant 0 : i32
    %c0_i32_0 = arith.constant 0 : i32
    %c0_i32_1 = arith.constant 0 : i32
    return %arg0, %c0_i32, %c0_i32_0 : i32, i32, i32
  }
}

</mosaic_0001>

<bundles_post_ra>
// kernel: fused_forward.1
= control target key start
LH: loop header
LB: loop body
LE: loop exit
PB: predicated region body
PF: predicated region fallthrough
CT: control target
= control target key end

     0   :  { %17 = vsyncpa [#allocation3], 0  ;;  %s3338_s0 = inlined_call_operand.vmem [shape: f32[9,256], index: 0, kind: input, shape index: {}]   ;;  %s3339_s1 = inlined_call_operand.vmem [shape: f32[2,8,256], index: 1, kind: input, shape index: {}]   ;;  %s3340_s2 = inlined_call_operand.vmem [shape: f32[8,72], index: 2, kind: input, shape index: {}]   ;;  %s3341_s3 = inlined_call_operand.vmem [shape: f32[8,1], index: 3, kind: input, shape index: {}]   ;;  %s3342_s4 = inlined_call_operand.vmem [shape: f32[8,72], index: 4, kind: input, shape index: {}]   ;;  %s3343_s5 = inlined_call_operand.vmem [shape: f32[8,1], index: 5, kind: input, shape index: {}]   ;;  %s3344_s6 = inlined_call_operand.hbm [shape: f32[8,256,128], index: 6, kind: input, shape index: {}]   ;;  %s3345_s7 = inlined_call_operand.vmem [shape: f32[1,128], index: 7, kind: input, shape index: {}]   ;;  %s3346_s8 = inlined_call_operand.vmem [shape: f32[2,8,256], index: 8, kind: output, shape index: {0}]   ;;  %s3347_s9 = inlined_call_operand.vmem [shape: f32[2,8,256], index: 9, kind: output, shape index: {1}]   ;;  %s3348_s10 = inlined_call_operand.vmem [shape: f32[2,8,256], index: 10, kind: output, shape index: {2}]   ;;  %s3349_s11 = inlined_call_operand.hbm [shape: f32[2,1,128], index: 11, kind: output, shape index: {3}]  }
   0x1   :  { %18 = vsyncpa [#allocation4], 0 }
   0x2   :  { %20 = vsyncpa [#allocation4 + $0x1], 0  ;;  %s2831_s17 = smov 0   ;;  %s2833_s18 = smov 0  }
   0x3   :  { %s2835_s19 = smov 0   ;;  %s2837_s20 = smov 0  }
   0x4 LB: > { %s2852_s21 = sadd.s32 4294967295, %s2754_s20   ;;  %s1998_s22 = sadd.s32 4294967294, %s2754_s20   ;;  %s2754_s20 = sphi %s2837_s20, %s3385_s20   ;;  %s2750_s19 = sphi %s2835_s19, %s3384_s19   ;;  %s2746_s18 = sphi %s2833_s18, %s3383_s18   ;;  %s2742_s17 = sphi %s2831_s17, %s3382_s17  }
   0x5   : > { %s2856_s23 = sadd.s32 1, %s2754_s20   ;;  %s284_s24 = sadd.s32 1, %s2750_s19 }
   0x6   : > { %s281_s25 = ssub.s32 %s2754_s20, %s2856_s23  ;;  %p294_p0 = scmp.ne.s32.totalorder %s2750_s19, %s2746_s18 }
   0x7   : > { %p282_p1 = scmp.eq.s32.totalorder %s281_s25, 0  ;;  %p295_p2 = scmp.eq.s32.totalorder %s2852_s21, 1 }
   0x8   : > { %p300_p3 = scmp.ne.s32.totalorder %s2746_s18, %s2742_s17  ;;  %p301_p4 = scmp.eq.s32.totalorder %s1998_s22, 1 }
   0x9   : > { %s2867_s26 = scalar_select %p282_p1, %s2750_s19, %s284_s24  }
   0xa   : > { %p2869_p5 = por %p295_p2, %p294_p0  ;;  %p2873_p6 = por %p301_p4, %p300_p3 }
   0xb   : > { %3365 = sst [smem:[#allocation8_spill]] %s2867_s26  ;;  %p1999_p7 = scmp.ge.s32.totalorder %s2754_s20, 1 }
   0xc   : > { %s3366_s27 = scalar_select %p2869_p5, 1, 0 }
   0xd   : > { %s3367_s28 = scalar_select %p2873_p6, 1, 0 }
   0xe   : > { %p308_p8 = scmp.lt.s32.totalorder %s2754_s20, 3  ;;  %p3350_p9 = scmp.eq.s32.totalorder %s2852_s21, 0 }
   0xf   : > { %s2756_s30 = smov [#allocation2]   ;;  %s2660_s16 = scalar_lea.hbm %s3344_s6, 32768 }
  0x10   : > { %p2880_p10 = pnand %p1999_p7, %p308_p8  ;;  %s335_s12 = sshll.u32 %s2756_s30, 4  ;;  %s336_s12 = int_to_ptr.vmem [resolvable:$true] %s335_s12 }
  0x11   : > { %p2661_p13 = scmp.ne.s32.totalorder %s3344_s6, %s2660_s16  ;;  %p2667_p3 = scmp.lt.u32.totalorder %s2660_s16, %s3344_s6 }
  0x12   : > { %s3368_s29 = scalar_select %p2880_p10, 1, 0 }
  0x13   : > { %p2602_p11 = pneg %p2880_p10 }
  0x15   : > { %p2888_p12 = pnand %p3350_p9, %p2602_p11 }
  0x17   : > { %p2662_p0 = pneg %p2888_p12 }
  0x19   : > { %p2663_p1 = pnand %p2662_p0, %p2661_p13 }
  0x1b   : > { %p2664_p2 = pneg %p2663_p1 }
  0x1d   : > { %p2669_p4 = pnand %p2667_p3, %p2664_p2 }
  0x1f   : > { %2672 = shalt.err (!%p2669_p4)
}
  0x20   : > { %s2673_s26 = scalar_lea.vmem %s336_s12, 32768  ;;  %p2681_p9 = scmp.lt.s32.totalorder %s336_s12, %s336_s12 }
  0x21   : > { %p2674_p7 = scmp.ne.s32.totalorder %s336_s12, %s2673_s26  ;;  %p2682_p6 = scmp.lt.s32.totalorder %s2673_s26, %s2673_s26 }
  0x23   : > { %p2676_p8 = pnand %p2674_p7, %p2662_p0  ;;  %p2683_p5 = por %p2682_p6, %p2681_p9 }
  0x25   : > { %p2677_p11 = pneg %p2676_p8 }
  0x27   : > { %p2684_p10 = pnand %p2683_p5, %p2677_p11 }
  0x29   : > { %2687 = shalt.err (!%p2684_p10)
}
  0x2a   : > { %s2757_s14 = smov 128   ;;  %s2758_s15 = smov 8  }
  0x2b   : > { %2605 = dma.hbm_to_vmem [thread:$0]  (!%p2888_p12), %s3344_s6, 32768, %s336_s12, [#allocation3], %s2757_s14, %s2757_s14, %s2758_s15  }
  0x2c   : > { %p3370_p13 = scmp.ne.s32.totalorder %s3368_s29, 0 }
  0x2d   : > { %p3371_p1 = scmp.eq.s32.totalorder (!%p3370_p13), %s2852_s21, 0 }
  0x2e   : > { %362 = sbr.rel (%p3370_p13) target bundleno = 1139 (0x473), region = 52 }
  0x35   : > { %2733 = dma.done.wait (%p3371_p1), [#allocation3], 32768   ;;  %p3372_p0 = pmov %p3371_p1 }
  0x36   : > { %p416_p5 = scmp.lt.s32.totalorder %s2852_s21, 1  ;;  %s2759_s29 = smov 16   ;;  %v2765_v2 = vmov 0.0   ;;  %v2766_v3 = vmov 0   ;;  %v616_v4 = vld [vmem:[%s3341_s3] sm:$0xff]  ;;  %v457_v5 = vlaneseq  ;;  %vm622_vm8 = vcmask 588800  }
  0x37   : > { %2735 = vsyncadd (%p3372_p0), [#allocation3], 4294934528  ;;  %s2760_s30 = smov 17   ;;  %s3363_s14 = smov 15   ;;  %690 = vmatprep.mubr.f32.mxu0 %v2765_v2  ;;  %841 = vmatprep.mubr.f32.mxu1 %v2765_v2  ;;  %vm1800_vm9 = vcmask 1040384  }
  0x38   : > { %s417_s26 = scalar_select %p416_p5, %s2852_s21, 1  ;;  %2659 = vset.pattern.permute.xlu0 %v2766_v3  ;;  %v2961_v6 = vshrl.u32 %v457_v5, 7  ;;  %v2963_v7 = vand.u32 127, %v457_v5  ;;  %v2012_v10 = vld [vmem:[%s3338_s0 + $0x1] ss:$8 sm:$0x3] }
  0x39   : > { %s3361_s15 = smov 1   ;;  %s3359_s22 = smov 127   ;;  %v436_v11 = vld [vmem:[%s3338_s0] ss:$8 sm:$0x3] }
  0x3a   : > { %s2916_s16 = sshll.u32 %s417_s26, 4  ;;  %s3355_s24 = smov 113   ;;  %v2966_v8 = vsub.s32 0, %v2961_v6  ;;  %v2969_v9 = vsub.s32 1, %v2961_v6  ;;  %vm479_vm0 = vcmp.lt.s32.totalorder %v2963_v7, 16  ;;  %vm459_vm1 = vcmp.lt.s32.totalorder %v2963_v7, 17 }
  0x3b   : > { %s420_s12 = scalar_lea.vmem %s3339_s1, %s2916_s16  ;;  %s3353_s26 = smov 112   ;;  %v2013_v28 = vld [vmem:[%s3338_s0 + $0x2] ss:$8 sm:$0x3]  ;;  %vm499_vm2 = vcmp.lt.s32.totalorder %v2963_v7, 15  ;;  %vm519_vm3 = vcmp.lt.s32.totalorder %v2963_v7, 1 }
  0x3c   : > { %v2922_v0 = vld [vmem:[%s420_s12] sm:$0xff]  ;;  %v2928_v1 = vld [vmem:[%s420_s12 + $0x8] sm:$0xff]  ;;  %s3357_s13 = smov 111   ;;  %v2980_v14 = vrot.slane %v2012_v10, %v2966_v8  ;;  %v2983_v15 = vrot.slane %v436_v11, %v2966_v8  ;;  %v2986_v16 = vrot.slane %v436_v11, %v2969_v9  ;;  %v2989_v17 = vrot.slane %v2012_v10, %v2969_v9  ;;  %s425_s25 = scalar_lea.vmem %s3346_s8, %s2916_s16 }
  0x3d   : > { %475 = vrot.lane.b32.xlu1 %v2922_v0, %s2759_s29  ;;  %453 = vrot.lane.b32.xlu0 %v2922_v0, %s2760_s30  ;;  %v2014_v29 = vld [vmem:[%s3338_s0 + $0x3] ss:$8 sm:$0x3]  ;;  %v3012_v34 = vrot.slane %v2013_v28, %v2966_v8  ;;  %v3015_v35 = vrot.slane %v2013_v28, %v2969_v9  ;;  %v2015_v38 = vld [vmem:[%s3338_s0 + $0x5] ss:$8 sm:$0x3] }
  0x3e   : > { %v3018_v36 = vrot.slane %v2014_v29, %v2966_v8  ;;  %v3021_v37 = vrot.slane %v2014_v29, %v2969_v9  ;;  %vm539_vm4 = vcmp.lt.s32.totalorder %v2963_v7, 127  ;;  %v3036_v45 = vrot.slane %v2015_v38, %v2966_v8  ;;  %v2016_v59 = vld [vmem:[%s3338_s0 + $0x6] ss:$8 sm:$0x3]  ;;  %p3379_p9 = scmp.ne.s32.totalorder %s3366_s27, 0 }
  0x3f   : > { %v3039_v46 = vrot.slane %v2015_v38, %v2969_v9  ;;  %v2017_v60 = vld [vmem:[%s3338_s0 + $0x7] ss:$8 sm:$0x3]  ;;  %vm559_vm5 = vcmp.lt.s32.totalorder %v2963_v7, 113  ;;  %v3061_v3 = vrot.slane %v2016_v59, %v2966_v8  ;;  %vm579_vm6 = vcmp.lt.s32.totalorder %v2963_v7, 112 }
  0x40   : > { %v3068_v5 = vrot.slane %v2017_v60, %v2966_v8  ;;  %v3071_v10 = vrot.slane %v2017_v60, %v2969_v9  ;;  %vm599_vm7 = vcmp.lt.s32.totalorder %v2963_v7, 111  ;;  %v615_v38 = vld [vmem:[%s3340_s2] sm:$0xff]  ;;  %v938_v7 = vld [vmem:[#allocation2 + $0x110] sm:$0xff] }
  0x41   : > { %477 = vrot.lane.b32.xlu1 %v2928_v1, %s2759_s29  ;;  %455 = vrot.lane.b32.xlu0 %v2928_v1, %s2760_s30 }
  0x45   : > { %497 = vrot.lane.b32.xlu1 %v2928_v1, %s3363_s14  ;;  %495 = vrot.lane.b32.xlu0 %v2922_v0, %s3363_s14  ;;  %s430_s14 = scalar_lea.vmem %s3347_s9, %s2916_s16 }
  0x49   : > { %517 = vrot.lane.b32.xlu1 %v2928_v1, %s3361_s15  ;;  %515 = vrot.lane.b32.xlu0 %v2922_v0, %s3361_s15  ;;  %s3374_s15 = smov 1  }
  0x4d   : > { %537 = vrot.lane.b32.xlu1 %v2928_v1, %s3359_s22  ;;  %535 = vrot.lane.b32.xlu0 %v2922_v0, %s3359_s22  ;;  %s3373_s22 = smov 15  }
  0x51   : > { %557 = vrot.lane.b32.xlu1 %v2928_v1, %s3355_s24  ;;  %555 = vrot.lane.b32.xlu0 %v2922_v0, %s3355_s24  ;;  %s3375_s24 = smov 127  }
  0x55   : > { %577 = vrot.lane.b32.xlu1 %v2928_v1, %s3353_s26  ;;  %575 = vrot.lane.b32.xlu0 %v2922_v0, %s3353_s26  ;;  %s3376_s26 = smov 113  }
  0x59   : > { %597 = vrot.lane.b32.xlu1 %v2928_v1, %s3357_s13  ;;  %595 = vrot.lane.b32.xlu0 %v2922_v0, %s3357_s13 }
  0x5d   : > { %619 = vperm.xlu0 %2659, %v616_v4   ;;  %v3064_v4 = vrot.slane %v2016_v59, %v2969_v9 }
  0xaf   : > { %v476_v12 = vpop.permute.xlu1 %475  ;;  %v454_v13 = vpop.permute.xlu0 %453 }
  0xb3   : > { %v478_v18 = vpop.permute.xlu1 %477  ;;  %v456_v19 = vpop.permute.xlu0 %455 }
  0xb4   : > { %v480_v20 = vsel %vm479_vm0, %v476_v12, %v478_v18  ;;  %v481_v21 = vsel %vm479_vm0, %v478_v18, %v476_v12  ;;  %v460_v22 = vsel %vm459_vm1, %v454_v13, %v456_v19  ;;  %v461_v23 = vsel %vm459_vm1, %v456_v19, %v454_v13 }
  0xb5   : > { %v493_v24 = vmul.f32 %v2980_v14, %v481_v21  ;;  %v473_v25 = vmul.f32 %v2983_v15, %v461_v23  ;;  %v474_v26 = vmul.f32 %v2986_v16, %v460_v22  ;;  %v494_v27 = vmul.f32 %v2989_v17, %v480_v20 }
  0xb7   : > { %v498_v30 = vpop.permute.xlu1 %497  ;;  %v496_v31 = vpop.permute.xlu0 %495  ;;  %v2308_v32 = vpack.c.bf16 %v494_v27, %v474_v26  ;;  %v2310_v33 = vpack.c.bf16 %v493_v24, %v473_v25 }
  0xb8   : > { %v500_v39 = vsel %vm499_vm2, %v496_v31, %v498_v30  ;;  %v501_v40 = vsel %vm499_vm2, %v498_v30, %v496_v31 }
  0xb9   : > { %2309 = vmatprep.subr.bf16.mxu0 %v2308_v32  ;;  %v513_v47 = vmul.f32 %v3012_v34, %v501_v40  ;;  %v514_v48 = vmul.f32 %v3015_v35, %v500_v39 }
  0xba   : > { %2311 = vmatpush1.bf16.msra.mxu0 %v2310_v33 }
  0xbb   : > { %v518_v41 = vpop.permute.xlu1 %517  ;;  %v516_v42 = vpop.permute.xlu0 %515 }
  0xbc   : > { %v520_v43 = vsel %vm519_vm3, %v516_v42, %v518_v41  ;;  %v521_v44 = vsel %vm519_vm3, %v518_v41, %v516_v42 }
  0xbd   : > { %v533_v49 = vmul.f32 %v3018_v36, %v521_v44  ;;  %v534_v50 = vmul.f32 %v3021_v37, %v520_v43 }
  0xbf   : > { %v538_v51 = vpop.permute.xlu1 %537  ;;  %v536_v52 = vpop.permute.xlu0 %535  ;;  %v2312_v53 = vpack.c.bf16 %v534_v50, %v514_v48  ;;  %v2314_v54 = vpack.c.bf16 %v533_v49, %v513_v47  ;;  %v768_v48 = vld [vmem:[%s3343_s5] sm:$0xff]  ;;  %v921_v50 = vld [vmem:[#allocation2 + $0x88] sm:$0xff] }
  0xc0   : > { %v540_v55 = vsel %vm539_vm4, %v536_v52, %v538_v51  ;;  %v541_v56 = vsel %vm539_vm4, %v538_v51, %v536_v52  ;;  %v920_v49 = vld [vmem:[#allocation2 + $0x80] sm:$0xff] }
  0xc1   : > { %v553_v57 = vmul.f32 %v3036_v45, %v540_v55  ;;  %v554_v58 = vmul.f32 %v3039_v46, %v541_v56  ;;  %2313 = vmatprep.subr.bf16.mxu0 %v2312_v53  ;;  %v904_v51 = vld [vmem:[#allocation2] sm:$0xff]  ;;  %v2340_v52 = vpack.c.bf16 %v921_v50, %v920_v49  ;;  %v905_v53 = vld [vmem:[#allocation2 + $0x8] sm:$0xff]  ;;  %v922_v55 = vld [vmem:[#allocation2 + $0x90] sm:$0xff] }
  0xc2   : > { %2315 = vmatpush1.bf16.msra.mxu0 %v2314_v54  ;;  %v2342_v54 = vpack.c.bf16 %v905_v53, %v904_v51  ;;  %v923_v56 = vld [vmem:[#allocation2 + $0x98] sm:$0xff] }
  0xc3   : > { %v558_v61 = vpop.permute.xlu1 %557  ;;  %v556_v62 = vpop.permute.xlu0 %555  ;;  %v2316_v63 = vpack.c.bf16 %v554_v58, %v2928_v1  ;;  %v2318_v2 = vpack.c.bf16 %v553_v57, %v2922_v0  ;;  %v2018_v1 = vld [vmem:[%s3338_s0 + $0x10] ss:$8 sm:$0x3]  ;;  %v2344_v59 = vpack.c.bf16 %v923_v56, %v922_v55 }
  0xc4   : > { %v560_v0 = vsel %vm559_vm5, %v556_v62, %v558_v61  ;;  %v561_v11 = vsel %vm559_vm5, %v558_v61, %v556_v62  ;;  %v3086_v20 = vrot.slane %v2018_v1, %v2969_v9  ;;  %v3093_v25 = vrot.slane %v2018_v1, %v2966_v8  ;;  %v906_v57 = vld [vmem:[#allocation2 + $0x10] sm:$0xff]  ;;  %v907_v58 = vld [vmem:[#allocation2 + $0x18] sm:$0xff]  ;;  %v924_v61 = vld [vmem:[#allocation2 + $0xa0] sm:$0xff] }
  0xc5   : > { %2317 = vmatprep.subr.bf16.mxu0 %v2316_v63  ;;  %v573_v21 = vmul.f32 %v3061_v3, %v560_v0  ;;  %v574_v22 = vmul.f32 %v3064_v4, %v561_v11  ;;  %v2346_v60 = vpack.c.bf16 %v907_v58, %v906_v57  ;;  %v925_v62 = vld [vmem:[#allocation2 + $0xa8] sm:$0xff]  ;;  %v926_v11 = vld [vmem:[#allocation2 + $0xb0] sm:$0xff] }
  0xc6   : > { %2319 = vmatpush1.bf16.msra.mxu0 %v2318_v2  ;;  %v2348_v63 = vpack.c.bf16 %v925_v62, %v924_v61  ;;  %v908_v2 = vld [vmem:[#allocation2 + $0x20] sm:$0xff]  ;;  %v909_v1 = vld [vmem:[#allocation2 + $0x28] sm:$0xff] }
  0xc7   : > { %v578_v12 = vpop.permute.xlu1 %577  ;;  %v576_v13 = vpop.permute.xlu0 %575  ;;  %v2350_v0 = vpack.c.bf16 %v909_v1, %v908_v2 }
  0xc8   : > { %v580_v18 = vsel %vm579_vm6, %v576_v13, %v578_v12  ;;  %v581_v19 = vsel %vm579_vm6, %v578_v12, %v576_v13  ;;  %v927_v12 = vld [vmem:[#allocation2 + $0xb8] sm:$0xff] }
  0xc9   : > { %v593_v23 = vmul.f32 %v3068_v5, %v580_v18  ;;  %v594_v24 = vmul.f32 %v3071_v10, %v581_v19  ;;  %v2352_v13 = vpack.c.bf16 %v927_v12, %v926_v11  ;;  %v910_v18 = vld [vmem:[#allocation2 + $0x30] sm:$0xff]  ;;  %v911_v19 = vld [vmem:[#allocation2 + $0x38] sm:$0xff] }
  0xcb   : > { %v598_v26 = vpop.permute.xlu1 %597  ;;  %v596_v27 = vpop.permute.xlu0 %595  ;;  %v2320_v28 = vpack.c.bf16 %v594_v24, %v574_v22  ;;  %v2322_v29 = vpack.c.bf16 %v593_v23, %v573_v21  ;;  %v2354_v21 = vpack.c.bf16 %v911_v19, %v910_v18  ;;  %v928_v22 = vld [vmem:[#allocation2 + $0xc0] sm:$0xff]  ;;  %v929_v23 = vld [vmem:[#allocation2 + $0xc8] sm:$0xff] }
  0xcc   : > { %v600_v30 = vsel %vm599_vm7, %v596_v27, %v598_v26  ;;  %v601_v31 = vsel %vm599_vm7, %v598_v26, %v596_v27  ;;  %v2356_v24 = vpack.c.bf16 %v929_v23, %v928_v22  ;;  %v912_v26 = vld [vmem:[#allocation2 + $0x40] sm:$0xff]  ;;  %v913_v27 = vld [vmem:[#allocation2 + $0x48] sm:$0xff] }
  0xcd   : > { %v614_v32 = vmul.f32 %v3086_v20, %v601_v31  ;;  %2321 = vmatprep.subr.bf16.mxu0 %v2320_v28  ;;  %v613_v33 = vmul.f32 %v3093_v25, %v600_v30  ;;  %v2358_v28 = vpack.c.bf16 %v913_v27, %v912_v26 }
  0xce   : > { %2323 = vmatpush1.bf16.msra.mxu0 %v2322_v29 }
  0xcf   : > { %642 = vmatprep.subr.mxu0 %v614_v32 }
  0xd2   : > { %643 = vmatpush1.msra.mxu0 %v613_v33 }
  0xd3   : > { %2019 = vmatmul.mubr.msk.f32.vlgmr.msra.gmra.mrb[0].mxu0 %vm622_vm8, %v615_v38  ;;  %2341 = vmatprep.subr.bf16.mxu0 %v2340_v52 }
  0xd4   : > { %2343 = vmatpush3.bf16.msra.mxu0 %v2342_v54 }
  0xd5   : > { %2345 = vmatprep.subr.bf16.mxu0 %v2344_v59 }
  0xd8   : > { %2347 = vmatpush3.bf16.msra.mxu0 %v2346_v60 }
  0xd9   : > { %2349 = vmatprep.subr.bf16.mxu0 %v2348_v63 }
  0xdc   : > { %v620_v39 = vpop.permute.xlu0 %619  ;;  %2351 = vmatpush3.bf16.msra.mxu0 %v2350_v0 }
  0xdd   : > { %2353 = vmatprep.subr.bf16.mxu0 %v2352_v13 }
  0xe0   : > { %2355 = vmatpush3.bf16.msra.mxu0 %v2354_v21 }
  0xe1   : > { %2357 = vmatprep.subr.bf16.mxu0 %v2356_v24 }
  0xe4   : > { %2359 = vmatpush3.bf16.msra.mxu0 %v2358_v28 }
 0x1a6   : > { %v692_v40 = vpop.f32.mrb[0].mxu0 }
 0x1a7   : > { %v693_v41 = vadd.f32 %v692_v40, %v620_v39  ;;  %v694_v42 = vpop.f32.mrb[1].mxu0 }
 0x1a8   : > { %v695_v43 = vadd.f32 %v694_v42, %v620_v39 }
 0x1a9   : > { %697 = vst [vmem:[%s425_s25] sm:$0xff] %v693_v41  ;;  %v3113_v44 = vmax.f32 %v693_v41, 0.0 }
 0x1aa   : > { %698 = vst [vmem:[%s425_s25 + $0x8] sm:$0xff] %v695_v43  ;;  %v3115_v47 = vmax.f32 %v695_v43, 0.0 }
 0x1ab   : > { %701 = vst [vmem:[%s430_s14] sm:$0xff] %v3113_v44  ;;  %711 = vrot.lane.b32.xlu0 %v3113_v44, %s2759_s29  ;;  %703 = vrot.lane.b32.xlu1 %v3113_v44, %s2760_s30 }
 0x1ac   : > { %702 = vst [vmem:[%s430_s14 + $0x8] sm:$0xff] %v3115_v47  ;;  %s3377_s14 = smov 112  }
 0x1af   : > { %719 = vrot.lane.b32.xlu0 %v3113_v44, %s3373_s22  ;;  %705 = vrot.lane.b32.xlu1 %v3115_v47, %s2760_s30  ;;  %s3378_s30 = smov 111  }
 0x1b3   : > { %727 = vrot.lane.b32.xlu0 %v3113_v44, %s3374_s15  ;;  %713 = vrot.lane.b32.xlu1 %v3115_v47, %s2759_s29 }
 0x1b7   : > { %735 = vrot.lane.b32.xlu0 %v3113_v44, %s3375_s24  ;;  %721 = vrot.lane.b32.xlu1 %v3115_v47, %s3373_s22 }
 0x1bb   : > { %743 = vrot.lane.b32.xlu0 %v3113_v44, %s3376_s26  ;;  %729 = vrot.lane.b32.xlu1 %v3115_v47, %s3374_s15 }
 0x1bf   : > { %751 = vrot.lane.b32.xlu0 %v3113_v44, %s3377_s14  ;;  %737 = vrot.lane.b32.xlu1 %v3115_v47, %s3375_s24  ;;  %s435_s24 = scalar_lea.vmem %s3348_s10, %s2916_s16  ;;  %s414_s16 = sand.u32 1, %s2746_s18  }
 0x1c0   : > { %s415_s29 = scalar_lea.vmem [#allocation5], %s414_s16  ;;  %s1835_s15 = scalar_lea.sflag [#allocation4], %s414_s16 }
 0x1c1   : > { %s1856_s13 = sshll.u32 %s415_s29, 4  ;;  %s3298_s13 = int_to_ptr.vmem [resolvable:$true] %s1856_s13 }
 0x1c3   : > { %759 = vrot.lane.b32.xlu0 %v3113_v44, %s3378_s30  ;;  %745 = vrot.lane.b32.xlu1 %v3115_v47, %s3376_s26 }
 0x1c7   : > { %771 = vperm.xlu0 %2659, %v768_v48   ;;  %753 = vrot.lane.b32.xlu1 %v3115_v47, %s3377_s14 }
 0x1cb   : > { %761 = vrot.lane.b32.xlu1 %v3115_v47, %s3378_s30  ;;  %s2021_s30 = sshll.u32 %s2852_s21, 4  ;;  %s2770_s21 = smov [#allocation5]  }
 0x1cc   : > { %s3296_s22 = scalar_lea.hbm %s3349_s11, %s2021_s30  ;;  %s2692_s26 = sshll.u32 %s2770_s21, 4  ;;  %s2693_s26 = int_to_ptr.vmem [resolvable:$false] %s2692_s26 }
 0x1cd   : > { %s2694_s14 = scalar_lea.vmem %s2693_s26, 32  ;;  %p2695_p2 = scmp.lt.s32.totalorder %s3298_s13, %s2693_s26 }
 0x21d   : > { %v712_v29 = vpop.permute.xlu0 %711  ;;  %v704_v30 = vpop.permute.xlu1 %703 }
 0x221   : > { %v720_v31 = vpop.permute.xlu0 %719  ;;  %v706_v32 = vpop.permute.xlu1 %705 }
 0x222   : > { %v707_v33 = vsel %vm459_vm1, %v704_v30, %v706_v32  ;;  %v708_v38 = vsel %vm459_vm1, %v706_v32, %v704_v30  ;;  %v952_v30 = vld [vmem:[#allocation2 + $0x180] sm:$0xff] }
 0x223   : > { %v709_v43 = vmul.f32 %v708_v38, %v2983_v15  ;;  %v710_v49 = vmul.f32 %v707_v33, %v2986_v16  ;;  %v937_v33 = vld [vmem:[#allocation2 + $0x108] sm:$0xff] }
 0x225   : > { %v728_v39 = vpop.permute.xlu0 %727  ;;  %v714_v40 = vpop.permute.xlu1 %713 }
 0x226   : > { %v715_v41 = vsel %vm479_vm0, %v712_v29, %v714_v40  ;;  %v716_v42 = vsel %vm479_vm0, %v714_v40, %v712_v29  ;;  %v767_v40 = vld [vmem:[%s3342_s4] sm:$0xff] }
 0x227   : > { %v717_v48 = vmul.f32 %v716_v42, %v2980_v14  ;;  %v718_v50 = vmul.f32 %v715_v41, %v2989_v17 }
 0x229   : > { %v722_v51 = vpop.permute.xlu1 %721  ;;  %v2324_v52 = vpack.c.bf16 %v718_v50, %v710_v49  ;;  %v2326_v53 = vpack.c.bf16 %v717_v48, %v709_v43  ;;  %v736_v54 = vpop.permute.xlu0 %735  ;;  %v939_v43 = vld [vmem:[#allocation2 + $0x118] sm:$0xff]  ;;  %v957_v48 = vld [vmem:[#allocation2 + $0x1a8] sm:$0xff] }
 0x22a   : > { %v723_v55 = vsel %vm499_vm2, %v720_v31, %v722_v51  ;;  %v724_v56 = vsel %vm499_vm2, %v722_v51, %v720_v31  ;;  %v953_v31 = vld [vmem:[#allocation2 + $0x188] sm:$0xff]  ;;  %v2378_v49 = vpack.c.bf16 %v939_v43, %v938_v7  ;;  %v940_v51 = vld [vmem:[#allocation2 + $0x120] sm:$0xff] }
 0x22b   : > { %2325 = vmatprep.subr.bf16.mxu1 %v2324_v52  ;;  %v725_v16 = vmul.f32 %v724_v56, %v3012_v34  ;;  %v726_v17 = vmul.f32 %v723_v55, %v3015_v35  ;;  %v2372_v38 = vpack.c.bf16 %v953_v31, %v952_v30  ;;  %v958_v52 = vld [vmem:[#allocation2 + $0x1b0] sm:$0xff]  ;;  %v935_v30 = vld [vmem:[#allocation2 + $0xf8] sm:$0xff]  ;;  %v1016_v43 = vld [vmem:[#allocation2 + $0x380] sm:$0xff] }
 0x22c   : > { %2327 = vmatpush1.bf16.msra.mxu1 %v2326_v53  ;;  %v959_v53 = vld [vmem:[#allocation2 + $0x1b8] sm:$0xff]  ;;  %v942_v56 = vld [vmem:[#allocation2 + $0x130] sm:$0xff] }
 0x22d   : > { %v730_v57 = vpop.permute.xlu1 %729  ;;  %v744_v60 = vpop.permute.xlu0 %743  ;;  %v2384_v55 = vpack.c.bf16 %v959_v53, %v958_v52 }
 0x22e   : > { %v731_v14 = vsel %vm519_vm3, %v728_v39, %v730_v57  ;;  %v732_v15 = vsel %vm519_vm3, %v730_v57, %v728_v39  ;;  %v943_v57 = vld [vmem:[#allocation2 + $0x138] sm:$0xff] }
 0x22f   : > { %v733_v58 = vmul.f32 %v732_v15, %v3018_v36  ;;  %v734_v59 = vmul.f32 %v731_v14, %v3021_v37  ;;  %v2386_v14 = vpack.c.bf16 %v943_v57, %v942_v56  ;;  %v960_v15 = vld [vmem:[#allocation2 + $0x1c0] sm:$0xff] }
 0x231   : > { %v738_v61 = vpop.permute.xlu1 %737  ;;  %v2328_v62 = vpack.c.bf16 %v734_v59, %v726_v17  ;;  %v2330_v63 = vpack.c.bf16 %v733_v58, %v725_v16  ;;  %v752_v11 = vpop.permute.xlu0 %751  ;;  %v961_v16 = vld [vmem:[#allocation2 + $0x1c8] sm:$0xff]  ;;  %v944_v58 = vld [vmem:[#allocation2 + $0x140] sm:$0xff] }
 0x232   : > { %v739_v2 = vsel %vm539_vm4, %v736_v54, %v738_v61  ;;  %v740_v1 = vsel %vm539_vm4, %v738_v61, %v736_v54  ;;  %v2388_v17 = vpack.c.bf16 %v961_v16, %v960_v15  ;;  %v945_v59 = vld [vmem:[#allocation2 + $0x148] sm:$0xff]  ;;  %v930_v61 = vld [vmem:[#allocation2 + $0xd0] sm:$0xff] }
 0x233   : > { %v741_v0 = vmul.f32 %v739_v2, %v3036_v45  ;;  %v742_v34 = vmul.f32 %v740_v1, %v3039_v46  ;;  %2329 = vmatprep.subr.bf16.mxu1 %v2328_v62  ;;  %v931_v62 = vld [vmem:[#allocation2 + $0xd8] sm:$0xff]  ;;  %v914_v2 = vld [vmem:[#allocation2 + $0x50] sm:$0xff] }
 0x234   : > { %2331 = vmatpush1.bf16.msra.mxu1 %v2330_v63  ;;  %v2360_v63 = vpack.c.bf16 %v931_v62, %v930_v61  ;;  %v915_v1 = vld [vmem:[#allocation2 + $0x58] sm:$0xff]  ;;  %v986_v61 = vld [vmem:[#allocation2 + $0x290] sm:$0xff] }
 0x235   : > { %v746_v35 = vpop.permute.xlu1 %745  ;;  %v2332_v36 = vpack.c.bf16 %v742_v34, %v3115_v47  ;;  %v2334_v37 = vpack.c.bf16 %v741_v0, %v3113_v44  ;;  %v760_v24 = vpop.permute.xlu0 %759  ;;  %v2362_v0 = vpack.c.bf16 %v915_v1, %v914_v2  ;;  %v962_v34 = vld [vmem:[#allocation2 + $0x1d0] sm:$0xff]  ;;  %v987_v62 = vld [vmem:[#allocation2 + $0x298] sm:$0xff] }
 0x236   : > { %v747_v12 = vsel %vm559_vm5, %v744_v60, %v746_v35  ;;  %v748_v13 = vsel %vm559_vm5, %v746_v35, %v744_v60  ;;  %v2390_v60 = vpack.c.bf16 %v945_v59, %v944_v58  ;;  %v963_v35 = vld [vmem:[#allocation2 + $0x1d8] sm:$0xff]  ;;  %2361 = vmatprep.subr.bf16.mxu0 %v2360_v63  ;;  %v969_v58 = vld [vmem:[#allocation2 + $0x208] sm:$0xff]  ;;  %v1000_v59 = vld [vmem:[#allocation2 + $0x300] sm:$0xff] }
 0x237   : > { %2333 = vmatprep.subr.bf16.mxu1 %v2332_v36  ;;  %v749_v19 = vmul.f32 %v747_v12, %v3061_v3  ;;  %v750_v21 = vmul.f32 %v748_v13, %v3064_v4  ;;  %v936_v4 = vld [vmem:[#allocation2 + $0x100] sm:$0xff]  ;;  %v2392_v36 = vpack.c.bf16 %v963_v35, %v962_v34  ;;  %2363 = vmatpush3.bf16.msra.mxu0 %v2362_v0  ;;  %v1018_v35 = vld [vmem:[#allocation2 + $0x390] sm:$0xff] }
 0x238   : > { %2335 = vmatpush1.bf16.msra.mxu1 %v2334_v37  ;;  %v2374_v41 = vpack.c.bf16 %v937_v33, %v936_v4  ;;  %v946_v37 = vld [vmem:[#allocation2 + $0x150] sm:$0xff]  ;;  %v932_v13 = vld [vmem:[#allocation2 + $0xe0] sm:$0xff] }
 0x239   : > { %v754_v18 = vpop.permute.xlu1 %753  ;;  %v966_v4 = vld [vmem:[#allocation2 + $0x1f0] sm:$0xff] }
 0x23a   : > { %v755_v45 = vsel %vm579_vm6, %v752_v11, %v754_v18  ;;  %v756_v46 = vsel %vm579_vm6, %v754_v18, %v752_v11  ;;  %v947_v11 = vld [vmem:[#allocation2 + $0x158] sm:$0xff]  ;;  %v933_v18 = vld [vmem:[#allocation2 + $0xe8] sm:$0xff] }
 0x23b   : > { %v757_v22 = vmul.f32 %v755_v45, %v3068_v5  ;;  %v758_v23 = vmul.f32 %v756_v46, %v3071_v10  ;;  %v954_v5 = vld [vmem:[#allocation2 + $0x190] sm:$0xff]  ;;  %v955_v10 = vld [vmem:[#allocation2 + $0x198] sm:$0xff]  ;;  %v2394_v12 = vpack.c.bf16 %v947_v11, %v946_v37  ;;  %v2364_v45 = vpack.c.bf16 %v933_v18, %v932_v13  ;;  %v916_v46 = vld [vmem:[#allocation2 + $0x60] sm:$0xff] }
 0x23c   : > { %v2376_v42 = vpack.c.bf16 %v955_v10, %v954_v5  ;;  %v967_v5 = vld [vmem:[#allocation2 + $0x1f8] sm:$0xff]  ;;  %v950_v10 = vld [vmem:[#allocation2 + $0x170] sm:$0xff]  ;;  %v2408_v11 = vpack.c.bf16 %v987_v62, %v986_v61  ;;  %v1009_v61 = vld [vmem:[#allocation2 + $0x348] sm:$0xff] }
 0x23d   : > { %v762_v26 = vpop.permute.xlu1 %761  ;;  %v2336_v27 = vpack.c.bf16 %v758_v23, %v750_v21  ;;  %v2338_v28 = vpack.c.bf16 %v757_v22, %v749_v19  ;;  %v917_v19 = vld [vmem:[#allocation2 + $0x68] sm:$0xff]  ;;  %v964_v22 = vld [vmem:[#allocation2 + $0x1e0] sm:$0xff]  ;;  %2365 = vmatprep.subr.bf16.mxu0 %v2364_v45  ;;  %v971_v13 = vld [vmem:[#allocation2 + $0x218] sm:$0xff] }
 0x23e   : > { %v764_v29 = vsel %vm599_vm7, %v762_v26, %v760_v24  ;;  %v763_v32 = vsel %vm599_vm7, %v760_v24, %v762_v26  ;;  %v2366_v21 = vpack.c.bf16 %v917_v19, %v916_v46  ;;  %v965_v23 = vld [vmem:[#allocation2 + $0x1e8] sm:$0xff]  ;;  %v948_v26 = vld [vmem:[#allocation2 + $0x160] sm:$0xff] }
 0x23f   : > { %v766_v3 = vmul.f32 %v764_v29, %v3086_v20  ;;  %2337 = vmatprep.subr.bf16.mxu1 %v2336_v27  ;;  %v765_v39 = vmul.f32 %v763_v32, %v3093_v25  ;;  %v956_v20 = vld [vmem:[#allocation2 + $0x1a0] sm:$0xff]  ;;  %v941_v25 = vld [vmem:[#allocation2 + $0x128] sm:$0xff]  ;;  %v2396_v24 = vpack.c.bf16 %v965_v23, %v964_v22  ;;  %v934_v29 = vld [vmem:[#allocation2 + $0xf0] sm:$0xff] }
 0x240   : > { %2339 = vmatpush1.bf16.msra.mxu1 %v2338_v28  ;;  %v2380_v50 = vpack.c.bf16 %v957_v48, %v956_v20  ;;  %v2382_v54 = vpack.c.bf16 %v941_v25, %v940_v51  ;;  %v949_v27 = vld [vmem:[#allocation2 + $0x168] sm:$0xff]  ;;  %2367 = vmatpush3.bf16.msra.mxu0 %v2366_v21  ;;  %v2368_v31 = vpack.c.bf16 %v935_v30, %v934_v29  ;;  %v918_v32 = vld [vmem:[#allocation2 + $0x70] sm:$0xff]  ;;  %v988_v21 = vld [vmem:[#allocation2 + $0x2a0] sm:$0xff] }
 0x241   : > { %793 = vmatprep.subr.mxu1 %v766_v3  ;;  %v2398_v28 = vpack.c.bf16 %v949_v27, %v948_v26  ;;  %v919_v3 = vld [vmem:[#allocation2 + $0x78] sm:$0xff]  ;;  %v1017_v20 = vld [vmem:[#allocation2 + $0x388] sm:$0xff]  ;;  %v1020_v29 = vld [vmem:[#allocation2 + $0x3a0] sm:$0xff] }
 0x242   : > { %v2370_v33 = vpack.c.bf16 %v919_v3, %v918_v32  ;;  %2369 = vmatprep.subr.bf16.mxu0 %v2368_v31  ;;  %v2436_v48 = vpack.c.bf16 %v1017_v20, %v1016_v43  ;;  %v989_v22 = vld [vmem:[#allocation2 + $0x2a8] sm:$0xff]  ;;  %v1003_v26 = vld [vmem:[#allocation2 + $0x318] sm:$0xff]  ;;  %v972_v32 = vld [vmem:[#allocation2 + $0x220] sm:$0xff] }
 0x243   : > { %v1021_v30 = vld [vmem:[#allocation2 + $0x3a8] sm:$0xff]  ;;  %v2412_v31 = vpack.c.bf16 %v989_v22, %v988_v21  ;;  %v974_v43 = vld [vmem:[#allocation2 + $0x230] sm:$0xff]  ;;  %v975_v20 = vld [vmem:[#allocation2 + $0x238] sm:$0xff] }
 0x244   : > { %794 = vmatpush1.msra.mxu1 %v765_v39  ;;  %v2400_v39 = vpack.c.bf16 %v967_v5, %v966_v4  ;;  %2371 = vmatpush3.bf16.msra.mxu0 %v2370_v33  ;;  %v973_v3 = vld [vmem:[#allocation2 + $0x228] sm:$0xff]  ;;  %v990_v33 = vld [vmem:[#allocation2 + $0x2b0] sm:$0xff]  ;;  %v991_v5 = vld [vmem:[#allocation2 + $0x2b8] sm:$0xff] }
 0x245   : > { %2020 = vmatmul.mubr.msk.f32.vlgmr.msra.gmra.mrb[0].mxu1 %vm622_vm8, %v767_v40  ;;  %2373 = vmatprep.subr.bf16.mxu1 %v2372_v38  ;;  %v951_v38 = vld [vmem:[#allocation2 + $0x178] sm:$0xff]  ;;  %v1029_v21 = vld [vmem:[#allocation2 + $0x3e8] sm:$0xff] }
 0x246   : > { %2375 = vmatpush3.bf16.msra.mxu1 %v2374_v41  ;;  %v2402_v40 = vpack.c.bf16 %v951_v38, %v950_v10  ;;  %v984_v41 = vld [vmem:[#allocation2 + $0x280] sm:$0xff]  ;;  %v772_v51 = vpop.permute.xlu0 %771  ;;  %v2444_v10 = vpack.c.bf16 %v1021_v30, %v1020_v29 }
 0x247   : > { %2377 = vmatprep.subr.bf16.mxu1 %v2376_v42  ;;  %v985_v42 = vld [vmem:[#allocation2 + $0x288] sm:$0xff]  ;;  %v1004_v38 = vld [vmem:[#allocation2 + $0x320] sm:$0xff] }
 0x248   : > { %v2404_v7 = vpack.c.bf16 %v985_v42, %v984_v41  ;;  %v1022_v41 = vld [vmem:[#allocation2 + $0x3b0] sm:$0xff]  ;;  %v1023_v42 = vld [vmem:[#allocation2 + $0x3b8] sm:$0xff]  ;;  %v1012_v30 = vld [vmem:[#allocation2 + $0x360] sm:$0xff] }
 0x24a   : > { %2379 = vmatpush3.bf16.msra.mxu1 %v2378_v49  ;;  %2405 = vmatprep.subr.bf16.mxu0 %v2404_v7  ;;  %v2769_v49 = vmov 1966171168   ;;  %v2416_v7 = vpack.c.bf16 %v991_v5, %v990_v33  ;;  %v1031_v33 = vld [vmem:[#allocation2 + $0x3f8] sm:$0xff] }
 0x24b   : > { %2381 = vmatprep.subr.bf16.mxu1 %v2380_v50  ;;  %v857_v50 = vunpack.c.l.s4 %v2769_v49  ;;  %v992_v49 = vld [vmem:[#allocation2 + $0x2c0] sm:$0xff] }
 0x24d   : > { %v858_v52 = vunpack.c.0.s8 %v857_v50  ;;  %v993_v50 = vld [vmem:[#allocation2 + $0x2c8] sm:$0xff] }
 0x24e   : > { %2383 = vmatpush3.bf16.msra.mxu1 %v2382_v54 }
 0x24f   : > { %2385 = vmatprep.subr.bf16.mxu1 %v2384_v55 }
 0x252   : > { %2387 = vmatpush3.bf16.msra.mxu1 %v2386_v14  ;;  %v3219_v14 = vsub.s32 %v858_v52, %v2961_v6  ;;  %v1001_v6 = vld [vmem:[#allocation2 + $0x308] sm:$0xff]  ;;  %v1007_v52 = vld [vmem:[#allocation2 + $0x338] sm:$0xff] }
 0x253   : > { %2389 = vmatprep.subr.bf16.mxu1 %v2388_v17  ;;  %v2438_v37 = vpack.c.bf16 %v1001_v6, %v1000_v59  ;;  %v994_v59 = vld [vmem:[#allocation2 + $0x2d0] sm:$0xff]  ;;  %v1008_v6 = vld [vmem:[#allocation2 + $0x340] sm:$0xff] }
 0x256   : > { %2391 = vmatpush3.bf16.msra.mxu1 %v2390_v60 }
 0x257   : > { %2393 = vmatprep.subr.bf16.mxu1 %v2392_v36  ;;  %v1019_v36 = vld [vmem:[#allocation2 + $0x398] sm:$0xff] }
 0x258   : > { %v2440_v23 = vpack.c.bf16 %v1019_v36, %v1018_v35  ;;  %v979_v35 = vld [vmem:[#allocation2 + $0x258] sm:$0xff]  ;;  %v2454_v36 = vpack.c.bf16 %v1009_v61, %v1008_v6  ;;  %v1034_v6 = vld [vmem:[#allocation2 + $0x410] sm:$0xff] }
 0x259   : > { %v1035_v61 = vld [vmem:[#allocation2 + $0x418] sm:$0xff] }
 0x25a   : > { %2395 = vmatpush3.bf16.msra.mxu1 %v2394_v12  ;;  %v970_v12 = vld [vmem:[#allocation2 + $0x210] sm:$0xff] }
 0x25b   : > { %2397 = vmatprep.subr.bf16.mxu1 %v2396_v24  ;;  %v1002_v24 = vld [vmem:[#allocation2 + $0x310] sm:$0xff] }
 0x25c   : > { %v2442_v4 = vpack.c.bf16 %v1003_v26, %v1002_v24  ;;  %v981_v24 = vld [vmem:[#allocation2 + $0x268] sm:$0xff] }
 0x25e   : > { %2399 = vmatpush3.bf16.msra.mxu1 %v2398_v28  ;;  %v2410_v28 = vpack.c.bf16 %v971_v13, %v970_v12  ;;  %v1010_v13 = vld [vmem:[#allocation2 + $0x350] sm:$0xff] }
 0x25f   : > { %2401 = vmatprep.subr.bf16.mxu1 %v2400_v39  ;;  %v1005_v39 = vld [vmem:[#allocation2 + $0x328] sm:$0xff] }
 0x262   : > { %2403 = vmatpush3.bf16.msra.mxu1 %v2402_v40  ;;  %v2414_v40 = vpack.c.bf16 %v973_v3, %v972_v32 }
 0x263   : > { %2437 = vmatprep.subr.bf16.mxu1 %v2436_v48  ;;  %v2446_v48 = vpack.c.bf16 %v1005_v39, %v1004_v38  ;;  %v983_v38 = vld [vmem:[#allocation2 + $0x278] sm:$0xff] }
 0x318   : > { %v843_v25 = vpop.f32.mrb[0].mxu1 }
 0x319   : > { %v844_v53 = vadd.f32 %v843_v25, %v772_v51  ;;  %v845_v54 = vpop.f32.mrb[1].mxu1  ;;  %v1006_v25 = vld [vmem:[#allocation2 + $0x330] sm:$0xff] }
 0x31a   : > { %v846_v55 = vadd.f32 %v845_v54, %v772_v51  ;;  %v2448_v51 = vpack.c.bf16 %v1023_v42, %v1022_v41  ;;  %v1024_v54 = vld [vmem:[#allocation2 + $0x3c0] sm:$0xff]  ;;  %v1049_v41 = vld [vmem:[#allocation2 + $0x488] sm:$0xff] }
 0x31b   : > { %v3213_v56 = vadd.f32 %v844_v53, %v3113_v44  ;;  %v968_v44 = vld [vmem:[#allocation2 + $0x200] sm:$0xff]  ;;  %v2418_v53 = vpack.c.bf16 %v975_v20, %v974_v43  ;;  %v1015_v43 = vld [vmem:[#allocation2 + $0x378] sm:$0xff] }
 0x31c   : > { %v3216_v57 = vadd.f32 %v846_v55, %v3115_v47  ;;  %v2406_v63 = vpack.c.bf16 %v969_v58, %v968_v44  ;;  %v1025_v55 = vld [vmem:[#allocation2 + $0x3c8] sm:$0xff]  ;;  %v2450_v58 = vpack.c.bf16 %v1007_v52, %v1006_v25  ;;  %v1050_v52 = vld [vmem:[#allocation2 + $0x490] sm:$0xff] }
 0x31d   : > { %850 = vst [vmem:[%s435_s24] sm:$0xff] %v3213_v56  ;;  %v977_v44 = vld [vmem:[#allocation2 + $0x248] sm:$0xff] }
 0x31e   : > { %851 = vst [vmem:[%s435_s24 + $0x8] sm:$0xff] %v3216_v57  ;;  %v854_v15 = vcombine.low %v3213_v56, %v3216_v57  ;;  %v855_v16 = vcombine.high %v3213_v56, %v3216_v57  ;;  %v1080_v56 = vld [vmem:[#allocation2 + $0x580] sm:$0xff]  ;;  %v1081_v57 = vld [vmem:[#allocation2 + $0x588] sm:$0xff]  ;;  %s2688_s24 = scalar_lea.vmem %s3298_s13, 16 }
 0x31f   : > { %p2689_p6 = scmp.ne.s32.totalorder %s3298_s13, %s2688_s24  ;;  %p2696_p3 = scmp.lt.s32.totalorder %s2694_s14, %s2688_s24 }
 0x320   : > { %v862_v17 = vrot.slane %v854_v15, %v3219_v14  ;;  %v2420_v15 = vpack.c.bf16 %v993_v50, %v992_v49  ;;  %v869_v32 = vrot.slane %v855_v16, %v3219_v14  ;;  %v1032_v49 = vld [vmem:[#allocation2 + $0x400] sm:$0xff]  ;;  %v1033_v50 = vld [vmem:[#allocation2 + $0x408] sm:$0xff] }
 0x321   : > { %p2690_p10 = pnand %p2689_p6, %p3379_p9  ;;  %p2697_p4 = por %p2696_p3, %p2695_p2 }
 0x322   : > { %v878_v47 = vrot.slane %v862_v17, %v3219_v14  ;;  %v870_v60 = vcombine.high %v862_v17, %v862_v17  ;;  %v976_v17 = vld [vmem:[#allocation2 + $0x240] sm:$0xff]  ;;  %v871_v16 = vcombine.high %v869_v32, %v869_v32  ;;  %v3247_v25 = vrot.slane %v869_v32, %v3219_v14 }
 0x323   : > { %v2422_v62 = vpack.c.bf16 %v977_v44, %v976_v17  ;;  %v2470_v17 = vpack.c.bf16 %v1033_v50, %v1032_v49  ;;  %v1090_v50 = vld [vmem:[#allocation2 + $0x5d0] sm:$0xff]  ;;  %p2691_p12 = pneg %p2690_p10 }
 0x324   : > { %v1167_v2 = vrot.slane %v878_v47, %v2969_v9  ;;  %v1163_v1 = vrot.slane %v878_v47, %v2966_v8  ;;  %v892_v0 = vrot.slane %v870_v60, %v3219_v14  ;;  %v3232_v34 = vcombine.high %v878_v47, %v878_v47  ;;  %v995_v47 = vld [vmem:[#allocation2 + $0x2d8] sm:$0xff] }
 0x325   : > { %v2452_v60 = vpack.c.bf16 %v1025_v55, %v1024_v54  ;;  %v2500_v54 = vpack.c.bf16 %v1081_v57, %v1080_v56  ;;  %v1064_v55 = vld [vmem:[#allocation2 + $0x500] sm:$0xff]  ;;  %v3250_v44 = vrot.slane %v871_v16, %v3219_v14  ;;  %v1059_v56 = vld [vmem:[#allocation2 + $0x4d8] sm:$0xff]  ;;  %p2698_p7 = pnand %p2697_p4, %p2691_p12 }
 0x326   : > { %1234 = vmatprep.mubr.f32.mxu0 %v1167_v2  ;;  %v1247_v18 = vrot.slane %v892_v0, %v2969_v9  ;;  %v1327_v45 = vrot.slane %v3232_v34, %v2969_v9  ;;  %v1243_v46 = vrot.slane %v892_v0, %v2966_v8  ;;  %v3238_v19 = vcombine.high %v892_v0, %v892_v0  ;;  %v1027_v2 = vld [vmem:[#allocation2 + $0x3d8] sm:$0xff]  ;;  %v978_v0 = vld [vmem:[#allocation2 + $0x250] sm:$0xff]  ;;  %v1072_v16 = vld [vmem:[#allocation2 + $0x540] sm:$0xff] }
 0x327   : > { %1235 = vmatmul.mubr.f32.vlgmr.msra.gmra.mrb[2].mxu0 %v1163_v1  ;;  %v2424_v1 = vpack.c.bf16 %v995_v47, %v994_v59  ;;  %v1083_v59 = vld [vmem:[#allocation2 + $0x598] sm:$0xff]  ;;  %v1323_v47 = vrot.slane %v3232_v34, %v2966_v8  ;;  %v1567_v34 = vrot.slane %v3250_v44, %v2969_v9 }
 0x328   : > { %2407 = vmatpush3.bf16.msra.mxu0 %v2406_v63  ;;  %1314 = vmatprep.mubr.f32.mxu1 %v1247_v18  ;;  %v1407_v27 = vrot.slane %v3238_v19, %v2969_v9  ;;  %v1026_v63 = vld [vmem:[#allocation2 + $0x3d0] sm:$0xff]  ;;  %v1011_v18 = vld [vmem:[#allocation2 + $0x358] sm:$0xff]  ;;  %v1403_v14 = vrot.slane %v3238_v19, %v2966_v8 }
 0x329   : > { %1394 = vmatprep.mubr.f32.mxu0 %v1327_v45  ;;  %1315 = vmatmul.mubr.f32.vlgmr.msra.gmra.mrb[2].mxu1 %v1243_v46  ;;  %v2456_v12 = vpack.c.bf16 %v1027_v2, %v1026_v63  ;;  %v2426_v45 = vpack.c.bf16 %v979_v35, %v978_v0  ;;  %v1028_v46 = vld [vmem:[#allocation2 + $0x3e0] sm:$0xff]  ;;  %v2458_v26 = vpack.c.bf16 %v1011_v18, %v1010_v13  ;;  %v1066_v35 = vld [vmem:[#allocation2 + $0x510] sm:$0xff] }
 0x32a   : > { %2439 = vmatpush3.bf16.msra.mxu1 %v2438_v37  ;;  %2409 = vmatprep.subr.bf16.mxu0 %v2408_v11  ;;  %v996_v37 = vld [vmem:[#allocation2 + $0x2e0] sm:$0xff]  ;;  %v997_v11 = vld [vmem:[#allocation2 + $0x2e8] sm:$0xff]  ;;  %v2460_v29 = vpack.c.bf16 %v1029_v21, %v1028_v46  ;;  %v1054_v46 = vld [vmem:[#allocation2 + $0x4b0] sm:$0xff] }
 0x32b   : > { %1474 = vmatprep.mubr.f32.mxu1 %v1407_v27  ;;  %2441 = vmatprep.subr.bf16.mxu1 %v2440_v23  ;;  %v2428_v22 = vpack.c.bf16 %v997_v11, %v996_v37  ;;  %v980_v23 = vld [vmem:[#allocation2 + $0x260] sm:$0xff]  ;;  %v998_v27 = vld [vmem:[#allocation2 + $0x2f0] sm:$0xff]  ;;  %v2474_v37 = vpack.c.bf16 %v1035_v61, %v1034_v6  ;;  %v1055_v21 = vld [vmem:[#allocation2 + $0x4b8] sm:$0xff] }
 0x32c   : > { %2411 = vmatpush3.bf16.msra.mxu0 %v2410_v28  ;;  %v999_v28 = vld [vmem:[#allocation2 + $0x2f8] sm:$0xff]  ;;  %v2430_v3 = vpack.c.bf16 %v981_v24, %v980_v23  ;;  %v1052_v2 = vld [vmem:[#allocation2 + $0x4a0] sm:$0xff]  ;;  %v1069_v24 = vld [vmem:[#allocation2 + $0x528] sm:$0xff] }
 0x32d   : > { %2413 = vmatprep.subr.bf16.mxu0 %v2412_v31  ;;  %v1013_v31 = vld [vmem:[#allocation2 + $0x368] sm:$0xff]  ;;  %v2432_v5 = vpack.c.bf16 %v999_v28, %v998_v27  ;;  %v1084_v11 = vld [vmem:[#allocation2 + $0x5a0] sm:$0xff]  ;;  %v1086_v27 = vld [vmem:[#allocation2 + $0x5b0] sm:$0xff] }
 0x32e   : > { %2443 = vmatpush3.bf16.msra.mxu1 %v2442_v4  ;;  %v1030_v4 = vld [vmem:[#allocation2 + $0x3f0] sm:$0xff]  ;;  %v2462_v39 = vpack.c.bf16 %v1013_v31, %v1012_v30  ;;  %v1036_v18 = vld [vmem:[#allocation2 + $0x420] sm:$0xff]  ;;  %v1087_v28 = vld [vmem:[#allocation2 + $0x5b8] sm:$0xff] }
 0x32f   : > { %2445 = vmatprep.subr.bf16.mxu1 %v2444_v10  ;;  %v982_v10 = vld [vmem:[#allocation2 + $0x270] sm:$0xff]  ;;  %v2464_v42 = vpack.c.bf16 %v1031_v33, %v1030_v4  ;;  %v1068_v23 = vld [vmem:[#allocation2 + $0x520] sm:$0xff]  ;;  %v1039_v31 = vld [vmem:[#allocation2 + $0x438] sm:$0xff]  ;;  %v2512_v33 = vpack.c.bf16 %v1087_v28, %v1086_v27 }
 0x330   : > { %2415 = vmatpush3.bf16.msra.mxu0 %v2414_v40  ;;  %v1048_v40 = vld [vmem:[#allocation2 + $0x480] sm:$0xff]  ;;  %v2434_v20 = vpack.c.bf16 %v983_v38, %v982_v10  ;;  %v1038_v30 = vld [vmem:[#allocation2 + $0x430] sm:$0xff]  ;;  %v2510_v32 = vpack.c.bf16 %v1069_v24, %v1068_v23  ;;  %v1057_v4 = vld [vmem:[#allocation2 + $0x4c8] sm:$0xff] }
 0x331   : > { %2417 = vmatprep.subr.bf16.mxu0 %v2416_v7  ;;  %v1014_v7 = vld [vmem:[#allocation2 + $0x370] sm:$0xff]  ;;  %v1071_v10 = vld [vmem:[#allocation2 + $0x538] sm:$0xff]  ;;  %v2482_v38 = vpack.c.bf16 %v1039_v31, %v1038_v30  ;;  %v1092_v6 = vld [vmem:[#allocation2 + $0x5e0] sm:$0xff] }
 0x332   : > { %2447 = vmatpush3.bf16.msra.mxu1 %v2446_v48  ;;  %v2468_v48 = vpack.c.bf16 %v1049_v41, %v1048_v40  ;;  %v1089_v40 = vld [vmem:[#allocation2 + $0x5c8] sm:$0xff]  ;;  %v1078_v23 = vld [vmem:[#allocation2 + $0x570] sm:$0xff]  ;;  %v1079_v24 = vld [vmem:[#allocation2 + $0x578] sm:$0xff] }
 0x333   : > { %2449 = vmatprep.subr.bf16.mxu1 %v2448_v51  ;;  %v2466_v51 = vpack.c.bf16 %v1015_v43, %v1014_v7  ;;  %v1041_v7 = vld [vmem:[#allocation2 + $0x448] sm:$0xff]  ;;  %v1144_v27 = vld [vmem:[#allocation2 + $0x780] sm:$0xff] }
 0x334   : > { %2419 = vmatpush3.bf16.msra.mxu0 %v2418_v53  ;;  %v1051_v53 = vld [vmem:[#allocation2 + $0x498] sm:$0xff]  ;;  %v1093_v61 = vld [vmem:[#allocation2 + $0x5e8] sm:$0xff]  ;;  %v1096_v30 = vld [vmem:[#allocation2 + $0x600] sm:$0xff] }
 0x335   : > { %2421 = vmatprep.subr.bf16.mxu0 %v2420_v15  ;;  %v1065_v15 = vld [vmem:[#allocation2 + $0x508] sm:$0xff] }
 0x336   : > { %2451 = vmatpush3.bf16.msra.mxu1 %v2450_v58  ;;  %v1082_v58 = vld [vmem:[#allocation2 + $0x590] sm:$0xff]  ;;  %v2502_v63 = vpack.c.bf16 %v1065_v15, %v1064_v55  ;;  %v1060_v15 = vld [vmem:[#allocation2 + $0x4e0] sm:$0xff]  ;;  %v1145_v28 = vld [vmem:[#allocation2 + $0x788] sm:$0xff] }
 0x337   : > { %2453 = vmatprep.subr.bf16.mxu1 %v2452_v60  ;;  %v2472_v60 = vpack.c.bf16 %v1051_v53, %v1050_v52  ;;  %v2504_v0 = vpack.c.bf16 %v1083_v59, %v1082_v58  ;;  %v1042_v53 = vld [vmem:[#allocation2 + $0x450] sm:$0xff]  ;;  %v1097_v31 = vld [vmem:[#allocation2 + $0x608] sm:$0xff] }
 0x338   : > { %2423 = vmatpush3.bf16.msra.mxu0 %v2422_v62  ;;  %v1487_v62 = vrot.slane %v3247_v25, %v2969_v9  ;;  %v1074_v59 = vld [vmem:[#allocation2 + $0x550] sm:$0xff] }
 0x339   : > { %2425 = vmatprep.subr.bf16.mxu0 %v2424_v1  ;;  %v1053_v1 = vld [vmem:[#allocation2 + $0x4a8] sm:$0xff] }
 0x33a   : > { %2455 = vmatpush3.bf16.msra.mxu1 %v2454_v36  ;;  %v1067_v36 = vld [vmem:[#allocation2 + $0x518] sm:$0xff]  ;;  %v2476_v13 = vpack.c.bf16 %v1053_v1, %v1052_v2  ;;  %v1045_v2 = vld [vmem:[#allocation2 + $0x468] sm:$0xff] }
 0x33b   : > { %2457 = vmatprep.subr.bf16.mxu1 %v2456_v12  ;;  %v1085_v12 = vld [vmem:[#allocation2 + $0x5a8] sm:$0xff]  ;;  %v2506_v19 = vpack.c.bf16 %v1067_v36, %v1066_v35  ;;  %v2524_v35 = vpack.c.bf16 %v1093_v61, %v1092_v6  ;;  %v1076_v36 = vld [vmem:[#allocation2 + $0x560] sm:$0xff] }
 0x33c   : > { %2427 = vmatpush3.bf16.msra.mxu0 %v2426_v45  ;;  %v1037_v45 = vld [vmem:[#allocation2 + $0x428] sm:$0xff]  ;;  %v1132_v61 = vld [vmem:[#allocation2 + $0x720] sm:$0xff] }
 0x33d   : > { %2429 = vmatprep.subr.bf16.mxu0 %v2428_v22  ;;  %v2508_v22 = vpack.c.bf16 %v1085_v12, %v1084_v11  ;;  %v1094_v11 = vld [vmem:[#allocation2 + $0x5f0] sm:$0xff]  ;;  %v1095_v12 = vld [vmem:[#allocation2 + $0x5f8] sm:$0xff] }
 0x33e   : > { %2459 = vmatpush3.bf16.msra.mxu1 %v2458_v26  ;;  %v2478_v26 = vpack.c.bf16 %v1037_v45, %v1036_v18  ;;  %v1046_v18 = vld [vmem:[#allocation2 + $0x470] sm:$0xff]  ;;  %v1047_v45 = vld [vmem:[#allocation2 + $0x478] sm:$0xff] }
 0x33f   : > { %2461 = vmatprep.subr.bf16.mxu1 %v2460_v29  ;;  %v2480_v29 = vpack.c.bf16 %v1055_v21, %v1054_v46  ;;  %v1112_v46 = vld [vmem:[#allocation2 + $0x680] sm:$0xff]  ;;  %v1113_v21 = vld [vmem:[#allocation2 + $0x688] sm:$0xff] }
 0x340   : > { %2431 = vmatpush3.bf16.msra.mxu0 %v2430_v3  ;;  %v1056_v3 = vld [vmem:[#allocation2 + $0x4c0] sm:$0xff] }
 0x341   : > { %2433 = vmatprep.subr.bf16.mxu0 %v2432_v5  ;;  %v1070_v5 = vld [vmem:[#allocation2 + $0x530] sm:$0xff]  ;;  %v2484_v41 = vpack.c.bf16 %v1057_v4, %v1056_v3  ;;  %v3262_v3 = vcombine.high %v3247_v25, %v3247_v25 }
 0x342   : > { %2463 = vmatpush3.bf16.msra.mxu1 %v2462_v39  ;;  %v1088_v39 = vld [vmem:[#allocation2 + $0x5c0] sm:$0xff]  ;;  %v2514_v43 = vpack.c.bf16 %v1071_v10, %v1070_v5  ;;  %v1114_v4 = vld [vmem:[#allocation2 + $0x690] sm:$0xff]  ;;  %v2564_v5 = vpack.c.bf16 %v1145_v28, %v1144_v27  ;;  %v1137_v28 = vld [vmem:[#allocation2 + $0x748] sm:$0xff] }
 0x343   : > { %2465 = vmatprep.subr.bf16.mxu1 %v2464_v42  ;;  %v1040_v42 = vld [vmem:[#allocation2 + $0x440] sm:$0xff]  ;;  %v2516_v57 = vpack.c.bf16 %v1089_v40, %v1088_v39  ;;  %v2534_v39 = vpack.c.bf16 %v1097_v31, %v1096_v30  ;;  %v3266_v40 = vcombine.high %v3250_v44, %v3250_v44  ;;  %v1154_v30 = vld [vmem:[#allocation2 + $0x7d0] sm:$0xff]  ;;  %v1155_v31 = vld [vmem:[#allocation2 + $0x7d8] sm:$0xff] }
 0x344   : > { %2435 = vmatpush3.bf16.msra.mxu0 %v2434_v20  ;;  %v1058_v20 = vld [vmem:[#allocation2 + $0x4d0] sm:$0xff]  ;;  %v2486_v49 = vpack.c.bf16 %v1041_v7, %v1040_v42  ;;  %v1128_v10 = vld [vmem:[#allocation2 + $0x700] sm:$0xff]  ;;  %v1147_v42 = vld [vmem:[#allocation2 + $0x798] sm:$0xff]  ;;  %v1483_v7 = vrot.slane %v3247_v25, %v2966_v8 }
 0x345   : > { %2469 = vmatprep.subr.bf16.mxu0 %v2468_v48  ;;  %v1073_v48 = vld [vmem:[#allocation2 + $0x548] sm:$0xff]  ;;  %v2488_v52 = vpack.c.bf16 %v1059_v56, %v1058_v20  ;;  %v1098_v20 = vld [vmem:[#allocation2 + $0x610] sm:$0xff]  ;;  %v1099_v56 = vld [vmem:[#allocation2 + $0x618] sm:$0xff]  ;;  %v1727_v25 = vrot.slane %v3266_v40, %v2969_v9 }
 0x346   : > { %2467 = vmatpush3.bf16.msra.mxu1 %v2466_v51  ;;  %v1091_v51 = vld [vmem:[#allocation2 + $0x5d8] sm:$0xff]  ;;  %v2518_v55 = vpack.c.bf16 %v1073_v48, %v1072_v16  ;;  %v1116_v48 = vld [vmem:[#allocation2 + $0x6a0] sm:$0xff] }
 0x347   : > { %1395 = vmatmul.mubr.f32.vlgmr.msra.gmra.mrb[4].mxu0 %v1323_v47  ;;  %2501 = vmatprep.subr.bf16.mxu1 %v2500_v54  ;;  %v1043_v54 = vld [vmem:[#allocation2 + $0x458] sm:$0xff]  ;;  %v2520_v58 = vpack.c.bf16 %v1091_v51, %v1090_v50  ;;  %v1563_v50 = vrot.slane %v3250_v44, %v2966_v8  ;;  %v1136_v27 = vld [vmem:[#allocation2 + $0x740] sm:$0xff] }
 0x348   : > { %2471 = vmatpush3.bf16.msra.mxu0 %v2470_v17  ;;  %1554 = vmatprep.mubr.f32.mxu0 %v1487_v62  ;;  %v1061_v17 = vld [vmem:[#allocation2 + $0x4e8] sm:$0xff]  ;;  %v1075_v47 = vld [vmem:[#allocation2 + $0x558] sm:$0xff] }
 0x349   : > { %1475 = vmatmul.mubr.f32.vlgmr.msra.gmra.mrb[4].mxu1 %v1403_v14  ;;  %2473 = vmatprep.subr.bf16.mxu0 %v2472_v60  ;;  %v2490_v60 = vpack.c.bf16 %v1043_v54, %v1042_v53  ;;  %v2492_v62 = vpack.c.bf16 %v1061_v17, %v1060_v15  ;;  %v2522_v1 = vpack.c.bf16 %v1075_v47, %v1074_v59  ;;  %v1062_v14 = vld [vmem:[#allocation2 + $0x4f0] sm:$0xff]  ;;  %v1131_v53 = vld [vmem:[#allocation2 + $0x718] sm:$0xff]  ;;  %v1149_v15 = vld [vmem:[#allocation2 + $0x7a8] sm:$0xff] }
 0x34a   : > { %2503 = vmatpush3.bf16.msra.mxu1 %v2502_v63  ;;  %1634 = vmatprep.mubr.f32.mxu1 %v1567_v34  ;;  %v1044_v63 = vld [vmem:[#allocation2 + $0x460] sm:$0xff]  ;;  %v1077_v34 = vld [vmem:[#allocation2 + $0x568] sm:$0xff]  ;;  %v2538_v54 = vpack.c.bf16 %v1099_v56, %v1098_v20  ;;  %v1118_v47 = vld [vmem:[#allocation2 + $0x6b0] sm:$0xff] }
 0x34b   : > { %2505 = vmatprep.subr.bf16.mxu1 %v2504_v0  ;;  %v1063_v0 = vld [vmem:[#allocation2 + $0x4f8] sm:$0xff]  ;;  %v1101_v59 = vld [vmem:[#allocation2 + $0x628] sm:$0xff] }
 0x34c   : > { %2475 = vmatpush3.bf16.msra.mxu0 %v2474_v37  ;;  %v2494_v37 = vpack.c.bf16 %v1045_v2, %v1044_v63  ;;  %v1151_v2 = vld [vmem:[#allocation2 + $0x7b8] sm:$0xff]  ;;  %v1157_v20 = vld [vmem:[#allocation2 + $0x7e8] sm:$0xff] }
 0x34d   : > { %2477 = vmatprep.subr.bf16.mxu0 %v2476_v13  ;;  %v2496_v13 = vpack.c.bf16 %v1063_v0, %v1062_v14  ;;  %v1102_v14 = vld [vmem:[#allocation2 + $0x630] sm:$0xff]  ;;  %v1103_v0 = vld [vmem:[#allocation2 + $0x638] sm:$0xff] }
 0x34e   : > { %2507 = vmatpush3.bf16.msra.mxu1 %v2506_v19  ;;  %v2526_v19 = vpack.c.bf16 %v1077_v34, %v1076_v36  ;;  %v1120_v36 = vld [vmem:[#allocation2 + $0x6c0] sm:$0xff]  ;;  %v1121_v34 = vld [vmem:[#allocation2 + $0x6c8] sm:$0xff] }
 0x34f   : > { %2509 = vmatprep.subr.bf16.mxu1 %v2508_v22  ;;  %v2528_v22 = vpack.c.bf16 %v1095_v12, %v1094_v11  ;;  %v1134_v11 = vld [vmem:[#allocation2 + $0x730] sm:$0xff]  ;;  %v1135_v12 = vld [vmem:[#allocation2 + $0x738] sm:$0xff] }
 0x350   : > { %2479 = vmatpush3.bf16.msra.mxu0 %v2478_v26  ;;  %v2498_v26 = vpack.c.bf16 %v1047_v45, %v1046_v18  ;;  %v1152_v18 = vld [vmem:[#allocation2 + $0x7c0] sm:$0xff]  ;;  %v1153_v45 = vld [vmem:[#allocation2 + $0x7c8] sm:$0xff] }
 0x351   : > { %2481 = vmatprep.subr.bf16.mxu0 %v2480_v29  ;;  %v2532_v29 = vpack.c.bf16 %v1113_v21, %v1112_v46  ;;  %v1104_v46 = vld [vmem:[#allocation2 + $0x640] sm:$0xff]  ;;  %v1105_v21 = vld [vmem:[#allocation2 + $0x648] sm:$0xff] }
 0x352   : > { %2511 = vmatpush3.bf16.msra.mxu1 %v2510_v32  ;;  %v2530_v32 = vpack.c.bf16 %v1079_v24, %v1078_v23  ;;  %v1122_v23 = vld [vmem:[#allocation2 + $0x6d0] sm:$0xff]  ;;  %v1123_v24 = vld [vmem:[#allocation2 + $0x6d8] sm:$0xff] }
 0x353   : > { %2513 = vmatprep.subr.bf16.mxu1 %v2512_v33  ;;  %v1115_v33 = vld [vmem:[#allocation2 + $0x698] sm:$0xff] }
 0x354   : > { %2483 = vmatpush3.bf16.msra.mxu0 %v2482_v38  ;;  %v1129_v38 = vld [vmem:[#allocation2 + $0x708] sm:$0xff] }
 0x355   : > { %2485 = vmatprep.subr.bf16.mxu0 %v2484_v41  ;;  %v1146_v41 = vld [vmem:[#allocation2 + $0x790] sm:$0xff]  ;;  %v2566_v16 = vpack.c.bf16 %v1129_v38, %v1128_v10  ;;  %v1124_v10 = vld [vmem:[#allocation2 + $0x6e0] sm:$0xff]  ;;  %v1125_v38 = vld [vmem:[#allocation2 + $0x6e8] sm:$0xff] }
 0x356   : > { %2515 = vmatpush3.bf16.msra.mxu1 %v2514_v43  ;;  %v2536_v43 = vpack.c.bf16 %v1115_v33, %v1114_v4  ;;  %v2568_v51 = vpack.c.bf16 %v1147_v42, %v1146_v41  ;;  %v1106_v4 = vld [vmem:[#allocation2 + $0x650] sm:$0xff]  ;;  %v1107_v33 = vld [vmem:[#allocation2 + $0x658] sm:$0xff]  ;;  %v2556_v56 = vpack.c.bf16 %v1125_v38, %v1124_v10 }
 0x357   : > { %2517 = vmatprep.subr.bf16.mxu1 %v2516_v57  ;;  %v1647_v57 = vrot.slane %v3262_v3, %v2969_v9  ;;  %v1150_v9 = vld [vmem:[#allocation2 + $0x7b0] sm:$0xff]  ;;  %v1139_v42 = vld [vmem:[#allocation2 + $0x758] sm:$0xff] }
 0x358   : > { %2487 = vmatpush3.bf16.msra.mxu0 %v2486_v49  ;;  %v1117_v49 = vld [vmem:[#allocation2 + $0x6a8] sm:$0xff]  ;;  %v1138_v41 = vld [vmem:[#allocation2 + $0x750] sm:$0xff] }
 0x359   : > { %2489 = vmatprep.subr.bf16.mxu0 %v2488_v52  ;;  %v1130_v52 = vld [vmem:[#allocation2 + $0x710] sm:$0xff]  ;;  %v2540_v17 = vpack.c.bf16 %v1117_v49, %v1116_v48  ;;  %v2586_v48 = vpack.c.bf16 %v1139_v42, %v1138_v41 }
 0x35a   : > { %2519 = vmatpush3.bf16.msra.mxu1 %v2518_v55  ;;  %v1148_v55 = vld [vmem:[#allocation2 + $0x7a0] sm:$0xff]  ;;  %v2570_v44 = vpack.c.bf16 %v1131_v53, %v1130_v52  ;;  %v1126_v49 = vld [vmem:[#allocation2 + $0x6f0] sm:$0xff]  ;;  %v1141_v53 = vld [vmem:[#allocation2 + $0x768] sm:$0xff] }
 0x35b   : > { %2521 = vmatprep.subr.bf16.mxu1 %v2520_v58  ;;  %v1100_v58 = vld [vmem:[#allocation2 + $0x620] sm:$0xff]  ;;  %v2572_v6 = vpack.c.bf16 %v1149_v15, %v1148_v55  ;;  %v1159_v55 = vld [vmem:[#allocation2 + $0x7f8] sm:$0xff] }
 0x35c   : > { %2491 = vmatpush3.bf16.msra.mxu0 %v2490_v60  ;;  %v1119_v60 = vld [vmem:[#allocation2 + $0x6b8] sm:$0xff]  ;;  %v2542_v63 = vpack.c.bf16 %v1101_v59, %v1100_v58  ;;  %v1140_v52 = vld [vmem:[#allocation2 + $0x760] sm:$0xff] }
 0x35d   : > { %2493 = vmatprep.subr.bf16.mxu0 %v2492_v62  ;;  %v1133_v62 = vld [vmem:[#allocation2 + $0x728] sm:$0xff]  ;;  %v1111_v58 = vld [vmem:[#allocation2 + $0x678] sm:$0xff]  ;;  %v2590_v59 = vpack.c.bf16 %v1141_v53, %v1140_v52 }
 0x35e   : > { %2523 = vmatpush3.bf16.msra.mxu1 %v2522_v1  ;;  %v2544_v1 = vpack.c.bf16 %v1119_v60, %v1118_v47  ;;  %v1142_v47 = vld [vmem:[#allocation2 + $0x770] sm:$0xff]  ;;  %v1143_v60 = vld [vmem:[#allocation2 + $0x778] sm:$0xff] }
 0x35f   : > { %2525 = vmatprep.subr.bf16.mxu1 %v2524_v35  ;;  %v2574_v35 = vpack.c.bf16 %v1133_v62, %v1132_v61  ;;  %v2594_v61 = vpack.c.bf16 %v1143_v60, %v1142_v47  ;;  %v1643_v62 = vrot.slane %v3262_v3, %v2966_v8 }
 0x360   : > { %2495 = vmatpush3.bf16.msra.mxu0 %v2494_v37  ;;  %v2576_v37 = vpack.c.bf16 %v1151_v2, %v1150_v9 }
 0x361   : > { %2497 = vmatprep.subr.bf16.mxu0 %v2496_v13  ;;  %v2546_v13 = vpack.c.bf16 %v1103_v0, %v1102_v14 }
 0x362   : > { %2527 = vmatpush3.bf16.msra.mxu1 %v2526_v19  ;;  %v2548_v19 = vpack.c.bf16 %v1121_v34, %v1120_v36 }
 0x363   : > { %2529 = vmatprep.subr.bf16.mxu1 %v2528_v22  ;;  %v2578_v22 = vpack.c.bf16 %v1135_v12, %v1134_v11 }
 0x364   : > { %2499 = vmatpush3.bf16.msra.mxu0 %v2498_v26  ;;  %v2580_v26 = vpack.c.bf16 %v1153_v45, %v1152_v18 }
 0x365   : > { %2533 = vmatprep.subr.bf16.mxu0 %v2532_v29  ;;  %v2550_v29 = vpack.c.bf16 %v1105_v21, %v1104_v46 }
 0x366   : > { %2531 = vmatpush3.bf16.msra.mxu1 %v2530_v32  ;;  %v2552_v32 = vpack.c.bf16 %v1123_v24, %v1122_v23 }
 0x367   : > { %1555 = vmatmul.mubr.f32.vlgmr.msra.gmra.mrb[6].mxu0 %v1483_v7  ;;  %2565 = vmatprep.subr.bf16.mxu1 %v2564_v5  ;;  %v2582_v5 = vpack.c.bf16 %v1137_v28, %v1136_v27  ;;  %v2554_v7 = vpack.c.bf16 %v1107_v33, %v1106_v4 }
 0x368   : > { %2535 = vmatpush3.bf16.msra.mxu0 %v2534_v39  ;;  %1714 = vmatprep.mubr.f32.mxu0 %v1647_v57  ;;  %v2584_v39 = vpack.c.bf16 %v1155_v31, %v1154_v30  ;;  %v1108_v57 = vld [vmem:[#allocation2 + $0x660] sm:$0xff] }
 0x369   : > { %1635 = vmatmul.mubr.f32.vlgmr.msra.gmra.mrb[6].mxu1 %v1563_v50  ;;  %2537 = vmatprep.subr.bf16.mxu0 %v2536_v43  ;;  %v1156_v43 = vld [vmem:[#allocation2 + $0x7e0] sm:$0xff]  ;;  %v1127_v50 = vld [vmem:[#allocation2 + $0x6f8] sm:$0xff] }
 0x36a   : > { %2567 = vmatpush3.bf16.msra.mxu1 %v2566_v16  ;;  %1794 = vmatprep.mubr.f32.mxu1 %v1727_v25  ;;  %v1109_v16 = vld [vmem:[#allocation2 + $0x668] sm:$0xff]  ;;  %v2560_v15 = vpack.c.bf16 %v1127_v50, %v1126_v49 }
 0x36b   : > { %2569 = vmatprep.subr.bf16.mxu1 %v2568_v51  ;;  %v2588_v51 = vpack.c.bf16 %v1157_v20, %v1156_v43  ;;  %v2558_v25 = vpack.c.bf16 %v1109_v16, %v1108_v57 }
 0x36c   : > { %2539 = vmatpush3.bf16.msra.mxu0 %v2538_v54  ;;  %v1158_v54 = vld [vmem:[#allocation2 + $0x7f0] sm:$0xff] }
 0x36d   : > { %2541 = vmatprep.subr.bf16.mxu0 %v2540_v17  ;;  %v1110_v17 = vld [vmem:[#allocation2 + $0x670] sm:$0xff] }
 0x36e   : > { %2571 = vmatpush3.bf16.msra.mxu1 %v2570_v44  ;;  %v2592_v44 = vpack.c.bf16 %v1159_v55, %v1158_v54 }
 0x36f   : > { %2573 = vmatprep.subr.bf16.mxu1 %v2572_v6  ;;  %v2562_v6 = vpack.c.bf16 %v1111_v58, %v1110_v17 }
 0x370   : > { %2543 = vmatpush3.bf16.msra.mxu0 %v2542_v63  ;;  %v1723_v63 = vrot.slane %v3266_v40, %v2966_v8 }
 0x371   : > { %2545 = vmatprep.subr.bf16.mxu0 %v2544_v1 }
 0x372   : > { %2575 = vmatpush3.bf16.msra.mxu1 %v2574_v35 }
 0x373   : > { %2577 = vmatprep.subr.bf16.mxu1 %v2576_v37 }
 0x374   : > { %2547 = vmatpush3.bf16.msra.mxu0 %v2546_v13 }
 0x375   : > { %2549 = vmatprep.subr.bf16.mxu0 %v2548_v19 }
 0x376   : > { %2579 = vmatpush3.bf16.msra.mxu1 %v2578_v22 }
 0x377   : > { %2581 = vmatprep.subr.bf16.mxu1 %v2580_v26 }
 0x378   : > { %2551 = vmatpush3.bf16.msra.mxu0 %v2550_v29 }
 0x379   : > { %2553 = vmatprep.subr.bf16.mxu0 %v2552_v32 }
 0x37a   : > { %2583 = vmatpush3.bf16.msra.mxu1 %v2582_v5 }
 0x37b   : > { %2585 = vmatprep.subr.bf16.mxu1 %v2584_v39 }
 0x37c   : > { %2555 = vmatpush3.bf16.msra.mxu0 %v2554_v7  ;;  %v1816_v7 = vld [vmem:[%s3345_s7] sm:$0x1] }
 0x37d   : > { %2557 = vmatprep.subr.bf16.mxu0 %v2556_v56 }
 0x37e   : > { %2587 = vmatpush3.bf16.msra.mxu1 %v2586_v48 }
 0x37f   : > { %2589 = vmatprep.subr.bf16.mxu1 %v2588_v51 }
 0x380   : > { %2559 = vmatpush3.bf16.msra.mxu0 %v2558_v25 }
 0x381   : > { %2561 = vmatprep.subr.bf16.mxu0 %v2560_v15 }
 0x382   : > { %2591 = vmatpush3.bf16.msra.mxu1 %v2590_v59 }
 0x383   : > { %2593 = vmatprep.subr.bf16.mxu1 %v2592_v44 }
 0x384   : > { %2563 = vmatpush3.bf16.msra.mxu0 %v2562_v6 }
 0x386   : > { %2595 = vmatpush3.bf16.msra.mxu1 %v2594_v61 }
 0x387   : > { %1715 = vmatmul.mubr.f32.vlgmr.msra.gmra.mrb[8].mxu0 %v1643_v62 }
 0x389   : > { %1795 = vmatmul.mubr.f32.vlgmr.msra.gmra.mrb[8].mxu1 %v1723_v63 }
 0x3fa   : > { %v2060_v9 = vpop.f32.mrb[2].mxu0 }
 0x3fb   : > { %v2061_v2 = vpop.f32.mrb[3].mxu0 }
 0x3fc   : > { %v2062_v1 = vadd.f32 %v2061_v2, %v2060_v9  ;;  %v2095_v14 = vpop.f32.mrb[2].mxu1 }
 0x3fd   : > { %v2096_v0 = vpop.f32.mrb[3].mxu1 }
 0x3fe   : > { %v2097_v35 = vadd.f32 %v2096_v0, %v2095_v14  ;;  %v1801_v36 = vsel %vm1800_vm9, %v2062_v1, 0.0 }
 0x400   : > { %v1802_v34 = vsel %vm1800_vm9, %v2097_v35, 0.0 }
 0x401   : > { %v1803_v37 = vadd.f32 %v1802_v34, %v1801_v36 }
 0x41a   : > { %v2130_v11 = vpop.f32.mrb[4].mxu0 }
 0x41b   : > { %v2131_v3 = vpop.f32.mrb[5].mxu0 }
 0x41c   : > { %v2132_v12 = vadd.f32 %v2131_v3, %v2130_v11  ;;  %v2165_v13 = vpop.f32.mrb[4].mxu1 }
 0x41d   : > { %v2166_v18 = vpop.f32.mrb[5].mxu1 }
 0x41e   : > { %v1804_v8 = vsel %vm1800_vm9, %v2132_v12, 0.0  ;;  %v2167_v40 = vadd.f32 %v2166_v18, %v2165_v13 }
 0x41f   : > { %v1805_v45 = vadd.f32 %v1804_v8, %v1803_v37 }
 0x420   : > { %v1806_v19 = vsel %vm1800_vm9, %v2167_v40, 0.0 }
 0x421   : > { %v1807_v46 = vadd.f32 %v1806_v19, %v1805_v45 }
 0x43a   : > { %v2200_v21 = vpop.f32.mrb[6].mxu0 }
 0x43b   : > { %v2201_v22 = vpop.f32.mrb[7].mxu0 }
 0x43c   : > { %v2202_v23 = vadd.f32 %v2201_v22, %v2200_v21  ;;  %v2235_v24 = vpop.f32.mrb[6].mxu1 }
 0x43d   : > { %v2236_v26 = vpop.f32.mrb[7].mxu1 }
 0x43e   : > { %v1808_v27 = vsel %vm1800_vm9, %v2202_v23, 0.0  ;;  %v2237_v28 = vadd.f32 %v2236_v26, %v2235_v24 }
 0x43f   : > { %v1809_v29 = vadd.f32 %v1808_v27, %v1807_v46 }
 0x440   : > { %v1810_v30 = vsel %vm1800_vm9, %v2237_v28, 0.0 }
 0x441   : > { %v1811_v31 = vadd.f32 %v1810_v30, %v1809_v29 }
 0x45a   : > { %v2270_v32 = vpop.f32.mrb[8].mxu0 }
 0x45b   : > { %v2271_v4 = vpop.f32.mrb[9].mxu0 }
 0x45c   : > { %v2272_v33 = vadd.f32 %v2271_v4, %v2270_v32  ;;  %v2305_v5 = vpop.f32.mrb[8].mxu1 }
 0x45d   : > { %v2306_v10 = vpop.f32.mrb[9].mxu1 }
 0x45e   : > { %v1812_v38 = vsel %vm1800_vm9, %v2272_v33, 0.0  ;;  %v2307_v39 = vadd.f32 %v2306_v10, %v2305_v5 }
 0x45f   : > { %v1813_v41 = vadd.f32 %v1812_v38, %v1811_v31 }
 0x460   : > { %v1814_v42 = vsel %vm1800_vm9, %v2307_v39, 0.0 }
 0x461   : > { %v1815_v43 = vadd.f32 %v1814_v42, %v1813_v41 }
 0x463   : > { %v1817_v20 = vadd.f32 %v1816_v7, %v1815_v43 }
 0x465   : > { %1818 = vst [vmem:[%s415_s29] sm:$0x1] %v1817_v20 }
 0x466   : > { %2701 = shalt.err (!%p2698_p7)
}
 0x467   : > { %s2702_s16 = scalar_lea.hbm %s3296_s22, 16  ;;  %s2706_s25 = scalar_lea.hbm %s3349_s11, 32 }
 0x468   : > { %p2703_p8 = scmp.ne.s32.totalorder %s3296_s22, %s2702_s16  ;;  %p2707_p1 = scmp.lt.u32.totalorder %s3296_s22, %s3349_s11 }
 0x469   : > { %p2708_p0 = scmp.lt.u32.totalorder %s2706_s25, %s2702_s16  ;;  %p2710_p6 = scmp.lt.u32.totalorder %s2702_s16, %s3296_s22 }
 0x46a   : > { %p2704_p11 = pnand %p2703_p8, %p3379_p9 }
 0x46b   : > { %p2709_p5 = por %p2708_p0, %p2707_p1 }
 0x46c   : > { %p2705_p13 = pneg %p2704_p11 }
 0x46d   : > { %p2711_p10 = por %p2710_p6, %p2709_p5 }
 0x46f   : > { %p2712_p12 = pnand %p2711_p10, %p2705_p13 }
 0x471   : > { %2715 = shalt.err (!%p2712_p12)
}
 0x472   : > { %2600 = dma.vmem_to_hbm [thread:$0]  (%p3379_p9), %s3298_s13, 16, %s3296_s22, %s1835_s15  }
 0x473 PF: > { %p2612_p2 = scmp.ge.s32.totalorder %s2754_s20, 2  ;;  %s1892_s24 = sand.u32 1, %s2742_s17  }
 0x474   : > { %p3380_p3 = scmp.ne.s32.totalorder %s3367_s28, 0  ;;  %s1893_s26 = scalar_lea.sflag [#allocation4], %s1892_s24 }
 0x476   : > { %p2607_p4 = pnand %p2612_p2, %p3380_p3 }
 0x478   : > { %2737 = dma.done.wait (!%p2607_p4), %s1893_s26, 16  }
 0x479   : > { %2739 = vsyncadd (!%p2607_p4), %s1893_s26, 4294967280  ;;  %s3381_s14 = sld [smem:[#allocation8_spill]]  ;;  %p23_p7 = scmp.ge.s32.totalorder %s2856_s23, 4  }
 0x47a   : > { %s3382_s17 = smov %s2746_s18  ;;  %s3383_s18 = smov %s2750_s19 }
 0x47b   : > { %s3385_s20 = smov %s2856_s23  ;;  %25 = sbr.rel (!%p23_p7) target bundleno = 4 (0x4), region = 135 }
 0x47f   : > { %s3384_s19 = smov %s3381_s14 }
 0x482   :  { %1897 = vsyncpa [#allocation3], 1 }
 0x483   :  { %1899 = vsyncpa [#allocation3 + $0x1], 1 }
 0x484   :  { %1900 = vsyncpa [#allocation4], 1 }
 0x485   :  { %1902 = vsyncpa [#allocation4 + $0x1], 1 }

</bundles_post_ra>
